<compile_context>
chip_gen: v7x
topology: tpu7x:2x2x1
jax: 0.10.0
libtpu: 0.0.40
codegen_flags: <defaults>
</compile_context>

<pallas_src>
import jax
import jax.numpy as jnp
from jax.experimental import pallas as pl
from jax.experimental.pallas import tpu as pltpu

N_CAT = 13          # self.n in the PyTorch module
D = 128             # "2048" in the original module, scaled down
H1 = 4 * D          # fc1 output width (2048*4 in the original)
NUM_CLASSES = 16
BATCH = 2
LANES = 128
SUBLANES = 8


def _fusionnet_kernel(xq_ref, xg_ref,
                      w1q_ref, w1g_ref, b1_ref,
                      w2_ref, b2_ref,
                      w3_ref, b3_ref,
                      w4_ref, b4_ref,
                      out_ref,
                      acc1_ref, acc2_ref):
    """Fused fc1->relu->fc2->relu->residual->fc3->fc4, weight-streaming."""
    n = pl.program_id(0)
    k = pl.program_id(1)
    n_last = pl.num_programs(0) - 1
    k_last = pl.num_programs(1) - 1
    bf16 = jnp.bfloat16

    # Very first grid step: seed the fc2 accumulator with its bias.
    @pl.when(jnp.logical_and(n == 0, k == 0))
    def _():
        acc2_ref[...] = jnp.broadcast_to(b2_ref[...], acc2_ref.shape)

    # Fresh fc1 column tile: seed with x_q @ W1[:D, n-tile] + b1 tile.
    @pl.when(k == 0)
    def _():
        acc1_ref[...] = (
            jnp.dot(xq_ref[...].astype(bf16), w1q_ref[...],
                    preferred_element_type=jnp.float32)
            + b1_ref[...])

    # Stream the x_gen part of the fc1 reduction (k = reduction axis).
    acc1_ref[...] += jnp.dot(xg_ref[...], w1g_ref[...],
                             preferred_element_type=jnp.float32)

    # fc1 tile complete: ReLU in f32, fold into the fc2 accumulator.
    @pl.when(k == k_last)
    def _():
        h1 = jnp.maximum(acc1_ref[...], 0.0)                        # (B, tn) f32
        acc2_ref[...] += jnp.dot(h1.astype(bf16), w2_ref[...],
                                 preferred_element_type=jnp.float32)

    # Final grid step: fc2 ReLU, residual, fc3, fc4, store logits.
    @pl.when(jnp.logical_and(n == n_last, k == k_last))
    def _():
        h2 = jnp.maximum(acc2_ref[...], 0.0)                        # (B, D) f32
        h = xq_ref[...] + h2                                        # residual (f32)
        xf = jnp.dot(h.astype(bf16), w3_ref[...],
                     preferred_element_type=jnp.float32) + b3_ref[...]
        xc = jnp.dot(xf.astype(bf16), w4_ref[...],
                     preferred_element_type=jnp.float32) + b4_ref[...]
        out_ref[...] = xc.astype(out_ref.dtype)


def _choose_tiles(d, h1):
    """fc1 output-column tile (tn) and fc1 reduction tile over x_gen (tk)."""
    kg = 12 * d
    tn = 256 if h1 <= 2048 else 512       # ~2 MiB bf16 W1/W2 tiles at D=2048
    tk = 512 if kg <= 4096 else 2048
    assert h1 % tn == 0 and kg % tk == 0
    return tn, tk


def _vmem_limit_bytes():
    """~3/4 of physical VMEM (96 MiB on v5e/v6e, 48 MiB on v7x)."""
    try:
        cap = int(pltpu.get_tpu_info().vmem_capacity_bytes)
    except Exception:
        cap = 64 << 20      # conservative fallback (works on every generation)
    return min((cap * 3) // 4, 100 << 20)


@jax.jit
def fusionnet_forward(x_q, x_gen, params):
    """x_q: (B, D) f32, x_gen: (B, 12*D) f32 -> logits (B, NUM_CLASSES) f32."""
    w1q, w1g, b1, w2, b2, w3, b3, w4, b4 = params
    b, d = x_q.shape
    h1 = w1q.shape[1]
    kg = x_gen.shape[1]
    c = w4.shape[1]

    # Pad batch to a full sublane group and logits to a lane-dense 128 block.
    b_pad = pl.cdiv(b, SUBLANES) * SUBLANES
    c_pad = pl.cdiv(c, LANES) * LANES

    xq_p = jnp.pad(x_q, ((0, b_pad - b), (0, 0)))                    # f32 (residual)
    xg_p = jnp.pad(x_gen, ((0, b_pad - b), (0, 0))).astype(jnp.bfloat16)
    w4p = jnp.pad(w4, ((0, 0), (0, c_pad - c)))
    b4p = jnp.pad(b4, ((0, 0), (0, c_pad - c)))

    tn, tk = _choose_tiles(d, h1)
    grid = (h1 // tn, kg // tk)

    flops = 2 * b_pad * (N_CAT * d * h1 + h1 * d + d * d + d * c_pad)
    weight_bytes = 2 * (N_CAT * d * h1 + h1 * d + d * d + d * c_pad)      # bf16
    act_bytes = (4 * b_pad * d                      # x_q (resident, one fetch)
                 + 2 * b_pad * kg * grid[0]         # x_gen bf16, re-streamed per n
                 + 4 * b_pad * c_pad                # logits
                 + 4 * (h1 + 3 * d + c_pad))        # biases (f32)
    cost = pl.CostEstimate(flops=flops, transcendentals=0,
                           bytes_accessed=weight_bytes + act_bytes)

    grid_spec = pltpu.PrefetchScalarGridSpec(
        num_scalar_prefetch=0,
        grid=grid,
        in_specs=[
            pl.BlockSpec((b_pad, d), lambda n, k: (0, 0)),      # x_q   (resident)
            pl.BlockSpec((b_pad, tk), lambda n, k: (0, k)),     # x_gen (K-tiled)
            pl.BlockSpec((d, tn), lambda n, k: (0, n)),         # W1[:D]  col tile
            pl.BlockSpec((tk, tn), lambda n, k: (k, n)),        # W1[D:]  streamed
            pl.BlockSpec((1, tn), lambda n, k: (0, n)),         # b1 tile
            pl.BlockSpec((tn, d), lambda n, k: (n, 0)),         # W2 row tile
            pl.BlockSpec((1, d), lambda n, k: (0, 0)),          # b2   (resident)
            pl.BlockSpec((d, d), lambda n, k: (0, 0)),          # W3   (resident)
            pl.BlockSpec((1, d), lambda n, k: (0, 0)),          # b3   (resident)
            pl.BlockSpec((d, c_pad), lambda n, k: (0, 0)),      # W4   (resident)
            pl.BlockSpec((1, c_pad), lambda n, k: (0, 0)),      # b4   (resident)
        ],
        out_specs=pl.BlockSpec((b_pad, c_pad), lambda n, k: (0, 0)),
        scratch_shapes=[
            pltpu.VMEM((b_pad, tn), jnp.float32),   # fc1 accumulator (per n-tile)
            pltpu.VMEM((b_pad, d), jnp.float32),    # fc2 accumulator (across n)
        ],
    )

    out_pad = pl.pallas_call(
        _fusionnet_kernel,
        out_shape=jax.ShapeDtypeStruct((b_pad, c_pad), jnp.float32),
        grid_spec=grid_spec,
        compiler_params=pltpu.CompilerParams(
            # Both grid axes carry accumulator state -> both "arbitrary".
            # TODO(synk): on v7x, split the n axis across the two TensorCores
            # (per-core partial fc2 accumulators + a tiny combine step).
            dimension_semantics=("arbitrary", "arbitrary"),
            vmem_limit_bytes=_vmem_limit_bytes(),
        ),
        cost_estimate=cost,
    )(xq_p, xg_p, w1q, w1g, b1, w2, b2, w3, b3, w4p, b4p)

    return out_pad[:b, :c]


def init_params(key):
    """Linear params stored as (in, out) for `x @ W`; weights bf16, biases f32.

    fc1's weight is pre-split into the rows multiplying x_q (first D) and the
    rows multiplying x_gen (remaining 12*D), so the kernel never needs the
    concatenated activation.
    """
    def linear(k, fan_in, fan_out):
        kw, kb = jax.random.split(k)
        bound = 1.0 / jnp.sqrt(fan_in)
        w = jax.random.uniform(kw, (fan_in, fan_out), jnp.float32, -bound, bound)
        b = jax.random.uniform(kb, (1, fan_out), jnp.float32, -bound, bound)
        return w.astype(jnp.bfloat16), b

    k1, k2, k3, k4 = jax.random.split(key, 4)
    w1, b1 = linear(k1, N_CAT * D, H1)       # fc1: Linear(2048*13, 2048*4)
    w2, b2 = linear(k2, H1, D)               # fc2: Linear(2048*4, 2048)
    w3, b3 = linear(k3, D, D)                # fc3: Linear(2048, 2048)
    w4, b4 = linear(k4, D, NUM_CLASSES)      # fc4: Linear(2048, num_classes)
    return (w1[:D], w1[D:], b1, w2, b2, w3, b3, w4, b4)


def reference_forward_mixed(x_q, x_gen, params):
    """Pure-JAX mirror of the kernel's bf16-matmul / f32-accumulate math."""
    w1q, w1g, b1, w2, b2, w3, b3, w4, b4 = params
    bf16 = jnp.bfloat16
    mm = lambda a, w: jnp.dot(a.astype(bf16), w.astype(bf16),
                              preferred_element_type=jnp.float32)
    h = jax.nn.relu(mm(x_q, w1q) + mm(x_gen, w1g) + b1)
    h = jax.nn.relu(mm(h, w2) + b2)
    h = x_q + h
    xf = mm(h, w3) + b3
    return mm(xf, w4) + b4


def reference_forward_f32(x_q, x_gen, params):
    """Full-f32 mirror of the original PyTorch forward (weights upcast)."""
    w1q, w1g, b1, w2, b2, w3, b3, w4, b4 = [p.astype(jnp.float32) for p in params]
    x = jnp.concatenate((x_q, x_gen), axis=1)
    w1 = jnp.concatenate((w1q, w1g), axis=0)
    h = jax.nn.relu(x @ w1 + b1)
    h = jax.nn.relu(h @ w2 + b2)
    h = x_q + h
    xf = h @ w3 + b3
    return xf @ w4 + b4


if __name__ == "__main__":
    key = jax.random.PRNGKey(0)
    kp, kq, kg = jax.random.split(key, 3)

    params = init_params(kp)
    x_q = jax.random.normal(kq, (BATCH, D), jnp.float32)
    x_gen = jax.random.normal(kg, (BATCH, (N_CAT - 1) * D), jnp.float32)

    out = jax.block_until_ready(fusionnet_forward(x_q, x_gen, params))
    assert out.shape == (BATCH, NUM_CLASSES)

    # Tight check against a reference that mirrors the kernel's mixed precision.
    ref_mixed = reference_forward_mixed(x_q, x_gen, params)
    assert jnp.allclose(out, ref_mixed, atol=2e-3, rtol=2e-3), \
        "mismatch vs bf16/f32 mixed-precision reference"

    # Loose sanity check against the full-f32 PyTorch-equivalent math.
    ref_f32 = reference_forward_f32(x_q, x_gen, params)
    assert jnp.allclose(out, ref_f32, atol=1e-1, rtol=1e-1), \
        "mismatch vs full-f32 reference"

    print("KERNEL_OK")
</pallas_src>

<mosaic_0001>
module attributes {stable_mosaic.version = 11 : i64} {
  func.func @_fusionnet_kernel(%arg0: i32, %arg1: i32, %arg2: memref<8x128xf32, #tpu.memory_space<vmem>>, %arg3: memref<8x512xbf16, #tpu.memory_space<vmem>>, %arg4: memref<128x256xbf16, #tpu.memory_space<vmem>>, %arg5: memref<512x256xbf16, #tpu.memory_space<vmem>>, %arg6: memref<1x256xf32, #tpu.memory_space<vmem>>, %arg7: memref<256x128xbf16, #tpu.memory_space<vmem>>, %arg8: memref<1x128xf32, #tpu.memory_space<vmem>>, %arg9: memref<128x128xbf16, #tpu.memory_space<vmem>>, %arg10: memref<1x128xf32, #tpu.memory_space<vmem>>, %arg11: memref<128x128xbf16, #tpu.memory_space<vmem>>, %arg12: memref<1x128xf32, #tpu.memory_space<vmem>>, %arg13: memref<8x128xf32, #tpu.memory_space<vmem>>, %arg14: memref<8x256xf32, #tpu.memory_space<vmem>>, %arg15: memref<8x128xf32, #tpu.memory_space<vmem>>) attributes {dimension_semantics = [#tpu.dimension_semantics<arbitrary>, #tpu.dimension_semantics<arbitrary>], iteration_bounds = array<i64: 2, 3>, scalar_prefetch = 0 : i64, scratch_operands = 2 : i64, tpu.core_type = #tpu.core_type<tc>, window_params = [{pipeline_mode = #tpu.pipeline_mode<synchronous>, transform_indices = @transform_0, window_bounds = array<i64: 8, 128>}, {transform_indices = @transform_1, window_bounds = array<i64: 8, 512>}, {transform_indices = @transform_2, window_bounds = array<i64: 128, 256>}, {transform_indices = @transform_3, window_bounds = array<i64: 512, 256>}, {transform_indices = @transform_4, window_bounds = array<i64: 1, 256>}, {transform_indices = @transform_5, window_bounds = array<i64: 256, 128>}, {pipeline_mode = #tpu.pipeline_mode<synchronous>, transform_indices = @transform_6, window_bounds = array<i64: 1, 128>}, {pipeline_mode = #tpu.pipeline_mode<synchronous>, transform_indices = @transform_7, window_bounds = array<i64: 128, 128>}, {pipeline_mode = #tpu.pipeline_mode<synchronous>, transform_indices = @transform_8, window_bounds = array<i64: 1, 128>}, {pipeline_mode = #tpu.pipeline_mode<synchronous>, transform_indices = @transform_9, window_bounds = array<i64: 128, 128>}, {pipeline_mode = #tpu.pipeline_mode<synchronous>, transform_indices = @transform_10, window_bounds = array<i64: 1, 128>}, {pipeline_mode = #tpu.pipeline_mode<synchronous>, transform_indices = @transform_11, window_bounds = array<i64: 8, 128>}]} {
    %c0_i32 = arith.constant 0 : i32
    %0 = arith.cmpi eq, %arg0, %c0_i32 : i32
    %c0_i32_0 = arith.constant 0 : i32
    %1 = arith.cmpi eq, %arg1, %c0_i32_0 : i32
    %2 = arith.andi %0, %1 : i1
    %3 = arith.extui %2 : i1 to i32
    %c0_i32_1 = arith.constant 0 : i32
    %4 = arith.cmpi ne, %3, %c0_i32_1 : i32
    scf.if %4 {
      %c0_14 = arith.constant 0 : index
      %c0_15 = arith.constant 0 : index
      %22 = vector.load %arg8[%c0_14, %c0_15] : memref<1x128xf32, #tpu.memory_space<vmem>>, vector<1x128xf32>
      %23 = vector.shape_cast %22 : vector<1x128xf32> to vector<1x128xf32>
      %24 = vector.broadcast %23 : vector<1x128xf32> to vector<8x128xf32>
      %c0_16 = arith.constant 0 : index
      %c0_17 = arith.constant 0 : index
      %25 = vector.load %arg15[%c0_16, %c0_17] : memref<8x128xf32, #tpu.memory_space<vmem>>, vector<8x128xf32>
      tpu.vector_store %arg15[%c0_16, %c0_17], %24 {strides = array<i32>} : memref<8x128xf32, #tpu.memory_space<vmem>>, vector<8x128xf32>,
    } else {
    }
    %c0_i32_2 = arith.constant 0 : i32
    %5 = arith.cmpi eq, %arg1, %c0_i32_2 : i32
    %6 = arith.extui %5 : i1 to i32
    %c0_i32_3 = arith.constant 0 : i32
    %7 = arith.cmpi ne, %6, %c0_i32_3 : i32
    scf.if %7 {
      %c0_14 = arith.constant 0 : index
      %c0_15 = arith.constant 0 : index
      %22 = vector.load %arg2[%c0_14, %c0_15] : memref<8x128xf32, #tpu.memory_space<vmem>>, vector<8x128xf32>
      %23 = arith.truncf %22 : vector<8x128xf32> to vector<8x128xbf16>
      %c0_16 = arith.constant 0 : index
      %c0_17 = arith.constant 0 : index
      %24 = vector.load %arg4[%c0_16, %c0_17] : memref<128x256xbf16, #tpu.memory_space<vmem>>, vector<128x256xbf16>
      %cst_18 = arith.constant dense<0.000000e+00> : vector<8x256xf32>
      %25 = tpu.matmul %23, %24, %cst_18 {dimension_numbers = #tpu.dot_dimension_numbers<[1], [0], [0], [1], [0, 0, 1, 1], [], []>} : vector<8x128xbf16>, vector<128x256xbf16>, vector<8x256xf32> -> vector<8x256xf32>
      %c0_19 = arith.constant 0 : index
      %c0_20 = arith.constant 0 : index
      %26 = vector.load %arg6[%c0_19, %c0_20] : memref<1x256xf32, #tpu.memory_space<vmem>>, vector<1x256xf32>
      %27 = vector.broadcast %26 : vector<1x256xf32> to vector<8x256xf32>
      %28 = arith.addf %25, %27 : vector<8x256xf32>
      %c0_21 = arith.constant 0 : index
      %c0_22 = arith.constant 0 : index
      %29 = vector.load %arg14[%c0_21, %c0_22] : memref<8x256xf32, #tpu.memory_space<vmem>>, vector<8x256xf32>
      tpu.vector_store %arg14[%c0_21, %c0_22], %28 {strides = array<i32>} : memref<8x256xf32, #tpu.memory_space<vmem>>, vector<8x256xf32>,
    } else {
    }
    %c0 = arith.constant 0 : index
    %c0_4 = arith.constant 0 : index
    %8 = vector.load %arg14[%c0, %c0_4] : memref<8x256xf32, #tpu.memory_space<vmem>>, vector<8x256xf32>
    %c0_5 = arith.constant 0 : index
    %c0_6 = arith.constant 0 : index
    %9 = vector.load %arg3[%c0_5, %c0_6] : memref<8x512xbf16, #tpu.memory_space<vmem>>, vector<8x512xbf16>
    %c0_7 = arith.constant 0 : index
    %c0_8 = arith.constant 0 : index
    %10 = vector.load %arg5[%c0_7, %c0_8] : memref<512x256xbf16, #tpu.memory_space<vmem>>, vector<512x256xbf16>
    %cst = arith.constant dense<0.000000e+00> : vector<8x256xf32>
    %11 = tpu.matmul %9, %10, %cst {dimension_numbers = #tpu.dot_dimension_numbers<[1], [0], [0], [1], [0, 0, 1, 1], [], []>} : vector<8x512xbf16>, vector<512x256xbf16>, vector<8x256xf32> -> vector<8x256xf32>
    %12 = arith.addf %8, %11 : vector<8x256xf32>
    %c0_9 = arith.constant 0 : index
    %c0_10 = arith.constant 0 : index
    %13 = vector.load %arg14[%c0_9, %c0_10] : memref<8x256xf32, #tpu.memory_space<vmem>>, vector<8x256xf32>
    tpu.vector_store %arg14[%c0_9, %c0_10], %12 {strides = array<i32>} : memref<8x256xf32, #tpu.memory_space<vmem>>, vector<8x256xf32>,
    %c2_i32 = arith.constant 2 : i32
    %14 = arith.cmpi eq, %arg1, %c2_i32 : i32
    %15 = arith.extui %14 : i1 to i32
    %c0_i32_11 = arith.constant 0 : i32
    %16 = arith.cmpi ne, %15, %c0_i32_11 : i32
    scf.if %16 {
      %c0_14 = arith.constant 0 : index
      %c0_15 = arith.constant 0 : index
      %22 = vector.load %arg14[%c0_14, %c0_15] : memref<8x256xf32, #tpu.memory_space<vmem>>, vector<8x256xf32>
      %cst_16 = arith.constant 0.000000e+00 : f32
      %23 = vector.broadcast %cst_16 : f32 to vector<8x256xf32>
      %24 = arith.maximumf %22, %23 : vector<8x256xf32>
      %c0_17 = arith.constant 0 : index
      %c0_18 = arith.constant 0 : index
      %25 = vector.load %arg15[%c0_17, %c0_18] : memref<8x128xf32, #tpu.memory_space<vmem>>, vector<8x128xf32>
      %26 = arith.truncf %24 : vector<8x256xf32> to vector<8x256xbf16>
      %c0_19 = arith.constant 0 : index
      %c0_20 = arith.constant 0 : index
      %27 = vector.load %arg7[%c0_19, %c0_20] : memref<256x128xbf16, #tpu.memory_space<vmem>>, vector<256x128xbf16>
      %cst_21 = arith.constant dense<0.000000e+00> : vector<8x128xf32>
      %28 = tpu.matmul %26, %27, %cst_21 {dimension_numbers = #tpu.dot_dimension_numbers<[1], [0], [0], [1], [0, 0, 1, 1], [], []>} : vector<8x256xbf16>, vector<256x128xbf16>, vector<8x128xf32> -> vector<8x128xf32>
      %29 = arith.addf %25, %28 : vector<8x128xf32>
      %c0_22 = arith.constant 0 : index
      %c0_23 = arith.constant 0 : index
      %30 = vector.load %arg15[%c0_22, %c0_23] : memref<8x128xf32, #tpu.memory_space<vmem>>, vector<8x128xf32>
      tpu.vector_store %arg15[%c0_22, %c0_23], %29 {strides = array<i32>} : memref<8x128xf32, #tpu.memory_space<vmem>>, vector<8x128xf32>,
    } else {
    }
    %c1_i32 = arith.constant 1 : i32
    %17 = arith.cmpi eq, %arg0, %c1_i32 : i32
    %c2_i32_12 = arith.constant 2 : i32
    %18 = arith.cmpi eq, %arg1, %c2_i32_12 : i32
    %19 = arith.andi %17, %18 : i1
    %20 = arith.extui %19 : i1 to i32
    %c0_i32_13 = arith.constant 0 : i32
    %21 = arith.cmpi ne, %20, %c0_i32_13 : i32
    scf.if %21 {
      %c0_14 = arith.constant 0 : index
      %c0_15 = arith.constant 0 : index
      %22 = vector.load %arg15[%c0_14, %c0_15] : memref<8x128xf32, #tpu.memory_space<vmem>>, vector<8x128xf32>
      %cst_16 = arith.constant 0.000000e+00 : f32
      %23 = vector.broadcast %cst_16 : f32 to vector<8x128xf32>
      %24 = arith.maximumf %22, %23 : vector<8x128xf32>
      %c0_17 = arith.constant 0 : index
      %c0_18 = arith.constant 0 : index
      %25 = vector.load %arg2[%c0_17, %c0_18] : memref<8x128xf32, #tpu.memory_space<vmem>>, vector<8x128xf32>
      %26 = arith.addf %25, %24 : vector<8x128xf32>
      %27 = arith.truncf %26 : vector<8x128xf32> to vector<8x128xbf16>
      %c0_19 = arith.constant 0 : index
      %c0_20 = arith.constant 0 : index
      %28 = vector.load %arg9[%c0_19, %c0_20] : memref<128x128xbf16, #tpu.memory_space<vmem>>, vector<128x128xbf16>
      %cst_21 = arith.constant dense<0.000000e+00> : vector<8x128xf32>
      %29 = tpu.matmul %27, %28, %cst_21 {dimension_numbers = #tpu.dot_dimension_numbers<[1], [0], [0], [1], [0, 0, 1, 1], [], []>} : vector<8x128xbf16>, vector<128x128xbf16>, vector<8x128xf32> -> vector<8x128xf32>
      %c0_22 = arith.constant 0 : index
      %c0_23 = arith.constant 0 : index
      %30 = vector.load %arg10[%c0_22, %c0_23] : memref<1x128xf32, #tpu.memory_space<vmem>>, vector<1x128xf32>
      %31 = vector.broadcast %30 : vector<1x128xf32> to vector<8x128xf32>
      %32 = arith.addf %29, %31 : vector<8x128xf32>
      %33 = arith.truncf %32 : vector<8x128xf32> to vector<8x128xbf16>
      %c0_24 = arith.constant 0 : index
      %c0_25 = arith.constant 0 : index
      %34 = vector.load %arg11[%c0_24, %c0_25] : memref<128x128xbf16, #tpu.memory_space<vmem>>, vector<128x128xbf16>
      %cst_26 = arith.constant dense<0.000000e+00> : vector<8x128xf32>
      %35 = tpu.matmul %33, %34, %cst_26 {dimension_numbers = #tpu.dot_dimension_numbers<[1], [0], [0], [1], [0, 0, 1, 1], [], []>} : vector<8x128xbf16>, vector<128x128xbf16>, vector<8x128xf32> -> vector<8x128xf32>
      %c0_27 = arith.constant 0 : index
      %c0_28 = arith.constant 0 : index
      %36 = vector.load %arg12[%c0_27, %c0_28] : memref<1x128xf32, #tpu.memory_space<vmem>>, vector<1x128xf32>
      %37 = vector.broadcast %36 : vector<1x128xf32> to vector<8x128xf32>
      %38 = arith.addf %35, %37 : vector<8x128xf32>
      %c0_29 = arith.constant 0 : index
      %c0_30 = arith.constant 0 : index
      %39 = vector.load %arg13[%c0_29, %c0_30] : memref<8x128xf32, #tpu.memory_space<vmem>>, vector<8x128xf32>
      tpu.vector_store %arg13[%c0_29, %c0_30], %38 {strides = array<i32>} : memref<8x128xf32, #tpu.memory_space<vmem>>, vector<8x128xf32>,
    } else {
    }
    return
  }
  func.func @transform_0(%arg0: i32, %arg1: i32) -> (i32, i32) {
    %c0_i32 = arith.constant 0 : i32
    %c0_i32_0 = arith.constant 0 : i32
    %c0_i32_1 = arith.constant 0 : i32
    return %c0_i32, %c0_i32_0 : i32, i32
  }
  func.func @transform_1(%arg0: i32, %arg1: i32) -> (i32, i32) {
    %c0_i32 = arith.constant 0 : i32
    %c0_i32_0 = arith.constant 0 : i32
    return %c0_i32, %arg1 : i32, i32
  }
  func.func @transform_2(%arg0: i32, %arg1: i32) -> (i32, i32) {
    %c0_i32 = arith.constant 0 : i32
    %c0_i32_0 = arith.constant 0 : i32
    return %c0_i32, %arg0 : i32, i32
  }
  func.func @transform_3(%arg0: i32, %arg1: i32) -> (i32, i32) {
    %c0_i32 = arith.constant 0 : i32
    return %arg1, %arg0 : i32, i32
  }
  func.func @transform_4(%arg0: i32, %arg1: i32) -> (i32, i32) {
    %c0_i32 = arith.constant 0 : i32
    %c0_i32_0 = arith.constant 0 : i32
    return %c0_i32, %arg0 : i32, i32
  }
  func.func @transform_5(%arg0: i32, %arg1: i32) -> (i32, i32) {
    %c0_i32 = arith.constant 0 : i32
    %c0_i32_0 = arith.constant 0 : i32
    return %arg0, %c0_i32 : i32, i32
  }
  func.func @transform_6(%arg0: i32, %arg1: i32) -> (i32, i32) {
    %c0_i32 = arith.constant 0 : i32
    %c0_i32_0 = arith.constant 0 : i32
    %c0_i32_1 = arith.constant 0 : i32
    return %c0_i32, %c0_i32_0 : i32, i32
  }
  func.func @transform_7(%arg0: i32, %arg1: i32) -> (i32, i32) {
    %c0_i32 = arith.constant 0 : i32
    %c0_i32_0 = arith.constant 0 : i32
    %c0_i32_1 = arith.constant 0 : i32
    return %c0_i32, %c0_i32_0 : i32, i32
  }
  func.func @transform_8(%arg0: i32, %arg1: i32) -> (i32, i32) {
    %c0_i32 = arith.constant 0 : i32
    %c0_i32_0 = arith.constant 0 : i32
    %c0_i32_1 = arith.constant 0 : i32
    return %c0_i32, %c0_i32_0 : i32, i32
  }
  func.func @transform_9(%arg0: i32, %arg1: i32) -> (i32, i32) {
    %c0_i32 = arith.constant 0 : i32
    %c0_i32_0 = arith.constant 0 : i32
    %c0_i32_1 = arith.constant 0 : i32
    return %c0_i32, %c0_i32_0 : i32, i32
  }
  func.func @transform_10(%arg0: i32, %arg1: i32) -> (i32, i32) {
    %c0_i32 = arith.constant 0 : i32
    %c0_i32_0 = arith.constant 0 : i32
    %c0_i32_1 = arith.constant 0 : i32
    return %c0_i32, %c0_i32_0 : i32, i32
  }
  func.func @transform_11(%arg0: i32, %arg1: i32) -> (i32, i32) {
    %c0_i32 = arith.constant 0 : i32
    %c0_i32_0 = arith.constant 0 : i32
    %c0_i32_1 = arith.constant 0 : i32
    return %c0_i32, %c0_i32_0 : i32, i32
  }
}

</mosaic_0001>

<bundles_post_ra>
// kernel: fusionnet_forward.1
= control target key start
LH: loop header
LB: loop body
LE: loop exit
PB: predicated region body
PF: predicated region fallthrough
CT: control target
= control target key end

     0   :  { %s3348_s0 = inlined_call_operand.vmem [shape: f32[8,128], index: 0, kind: input, shape index: {}]   ;;  %s3349_s1 = inlined_call_operand.vmem [shape: bf16[8,1536], index: 1, kind: input, shape index: {}]   ;;  %s3350_s2 = inlined_call_operand.hbm [shape: bf16[128,512], index: 2, kind: input, shape index: {}]   ;;  %s3351_s3 = inlined_call_operand.hbm [shape: bf16[1536,512], index: 3, kind: input, shape index: {}]   ;;  %s3352_s4 = inlined_call_operand.hbm [shape: f32[1,512], index: 4, kind: input, shape index: {}]   ;;  %s3353_s5 = inlined_call_operand.hbm [shape: bf16[512,128], index: 5, kind: input, shape index: {}]   ;;  %s3354_s6 = inlined_call_operand.hbm [shape: f32[1,128], index: 6, kind: input, shape index: {}]   ;;  %s3355_s7 = inlined_call_operand.hbm [shape: bf16[128,128], index: 7, kind: input, shape index: {}]   ;;  %s3356_s8 = inlined_call_operand.hbm [shape: f32[1,128], index: 8, kind: input, shape index: {}]   ;;  %s3357_s9 = inlined_call_operand.vmem [shape: bf16[128,128], index: 9, kind: input, shape index: {}]   ;;  %s3358_s10 = inlined_call_operand.vmem [shape: f32[1,128], index: 10, kind: input, shape index: {}]   ;;  %s3359_s11 = inlined_call_operand.vmem [shape: f32[8,128], index: 11, kind: output, shape index: {}]  }
   0x1   :  { %3387 = sst [smem:[#allocation29_spill]] %s3348_s0 }
   0x2   :  { %3388 = sst [smem:[#allocation30_spill]] %s3349_s1 }
   0x3   :  { %3389 = sst [smem:[#allocation31_spill]] %s3350_s2 }
   0x4   :  { %3390 = sst [smem:[#allocation32_spill]] %s3354_s6 }
   0x5   :  { %3391 = sst [smem:[#allocation33_spill]] %s3355_s7 }
   0x6   :  { %3392 = sst [smem:[#allocation34_spill]] %s3357_s9 }
   0x7   :  { %3393 = sst [smem:[#allocation35_spill]] %s3358_s10 }
   0x8   :  { %3394 = sst [smem:[#allocation36_spill]] %s3359_s11 }
   0x9   :  { %16 = vsyncpa [#allocation5], 0 }
   0xa   :  { %18 = vsyncpa [#allocation5 + $0x1], 0 }
   0xb   :  { %19 = vsyncpa [#allocation7], 0 }
   0xc   :  { %21 = vsyncpa [#allocation7 + $0x1], 0 }
   0xd   :  { %22 = vsyncpa [#allocation10], 0 }
   0xe   :  { %24 = vsyncpa [#allocation10 + $0x1], 0 }
   0xf   :  { %25 = vsyncpa [#allocation13], 0  ;;  %s2757_s17 = smov 0   ;;  %s2759_s18 = smov 0  }
  0x10   :  { %s2761_s19 = smov 0   ;;  %s2763_s20 = smov 0  }
  0x11   :  { %s2765_s21 = smov 0   ;;  %s2767_s22 = smov 0  }
  0x12   :  { %s2769_s23 = smov 0   ;;  %s2771_s24 = smov 0  }
  0x13   :  { %s2773_s25 = smov 0   ;;  %s2775_s26 = smov 0  }
  0x14   :  { %s2777_s27 = smov 0  }
  0x15 LB: > { %3395 = sst [smem:[#allocation21_spill]] %s2644_s18  ;;  %s3360_s28 = sadd.s32 4294967295, %s2680_s27   ;;  %s2680_s27 = sphi %s2777_s27, %s31_s27   ;;  %s2676_s26 = sphi %s2775_s26, %s3460_s26   ;;  %s2672_s25 = sphi %s2773_s25, %s3459_s25   ;;  %s2668_s24 = sphi %s2771_s24, %s3458_s24   ;;  %s2664_s23 = sphi %s2769_s23, %s3457_s23   ;;  %s2660_s22 = sphi %s2767_s22, %s3456_s22   ;;  %s2656_s21 = sphi %s2765_s21, %s3455_s21   ;;  %s2652_s20 = sphi %s2763_s20, %s3454_s20   ;;  %s2648_s19 = sphi %s2761_s19, %s3453_s19   ;;  %s2644_s18 = sphi %s2759_s18, %s3452_s18   ;;  %s2640_s17 = sphi %s2757_s17, %s3449_s17  }
  0x16   : > { %3396 = sst [smem:[#allocation22_spill]] %s2664_s23  ;;  %p110_p0 = scmp.ne.s32.totalorder %s2656_s21, %s2652_s20 }
  0x17   : > { %3397 = sst [smem:[#allocation23_spill]] %s2668_s24  ;;  %p2812_p1 = scmp.eq.s32.totalorder %s3360_s28, 0 }
  0x18   : > { %p138_p2 = scmp.ne.s32.totalorder %s2644_s18, %s2640_s17  ;;  %p1825_p3 = scmp.ge.s32.totalorder %s2680_s27, 1 }
  0x19   : > { %s3398_s29 = scalar_select %p2812_p1, 1, 0 }
  0x1a   : > { %p327_p4 = scmp.lt.s32.totalorder %s2680_s27, 7  ;;  %p2821_p5 = por %p2812_p1, %p110_p0 }
  0x1b   : > { %3399 = sst [smem:[#allocation24_spill]] %s3398_s29  ;;  %p2827_p6 = por %p138_p2, %p2812_p1 }
  0x1c   : > { %s3400_s30 = scalar_select %p2821_p5, 1, 0 }
  0x1d   : > { %s3402_s12 = scalar_select %p2827_p6, 1, 0 }
  0x1e   : > { %3401 = sst [smem:[#allocation25_spill]] %s3400_s30  ;;  %p2831_p7 = pnand %p1825_p3, %p327_p4 }
  0x1f   : > { %3403 = sst [smem:[#allocation26_spill]] %s3402_s12  ;;  %s2682_s14 = smov [#allocation11]  }
  0x20   : > { %s3404_s13 = scalar_select %p2831_p7, 1, 0 }
  0x21   : > { %p2081_p8 = pneg %p2831_p7  ;;  %s343_s15 = sshll.u32 %s2682_s14, 4  ;;  %s344_s15 = int_to_ptr.vmem [resolvable:$true] %s343_s15 }
  0x22   : > { %s2683_s17 = smov [#allocation12]   ;;  %s3406_s6 = sld [smem:[#allocation32_spill]] }
  0x23   : > { %p2839_p9 = pnand %p2081_p8, %p2812_p1  ;;  %s353_s20 = sshll.u32 %s2683_s17, 4  ;;  %s2843_s20 = int_to_ptr.vmem [resolvable:$true] %s353_s20 }
  0x25   : > { %s3405_s16 = scalar_select %p2839_p9, 1, 0 }
  0x26   : > { %p2853_p11 = pneg %p2839_p9 }
  0x28   : > { %s2366_s10 = scalar_lea.hbm %s3406_s6, 16 }
  0x29   : > { %p2367_p10 = scmp.ne.s32.totalorder %s3406_s6, %s2366_s10  ;;  %p2373_p0 = scmp.lt.u32.totalorder %s2366_s10, %s3406_s6 }
  0x2b   : > { %p2369_p12 = pnand %p2853_p11, %p2367_p10 }
  0x2d   : > { %p2370_p13 = pneg %p2369_p12 }
  0x2f   : > { %p2375_p2 = pnand %p2373_p0, %p2370_p13 }
  0x31   : > { %2378 = shalt.err (!%p2375_p2)
}
  0x32   : > { %s2379_s11 = scalar_lea.vmem %s344_s15, 16  ;;  %s2386_s0 = scalar_lea.vmem %s344_s15, 32 }
  0x33   : > { %p2380_p3 = scmp.ne.s32.totalorder %s344_s15, %s2379_s11  ;;  %p2387_p1 = scmp.lt.s32.totalorder %s344_s15, %s344_s15 }
  0x34   : > { %p2388_p6 = scmp.lt.s32.totalorder %s2386_s0, %s2379_s11 }
  0x35   : > { %p2382_p4 = pnand %p2380_p3, %p2853_p11 }
  0x36   : > { %p2389_p5 = por %p2388_p6, %p2387_p1 }
  0x37   : > { %p2383_p8 = pneg %p2382_p4 }
  0x39   : > { %p2390_p7 = pnand %p2389_p5, %p2383_p8 }
  0x3b   : > { %2393 = shalt.err (!%p2390_p7)
}
  0x3c   : > { %2084 = dma.hbm_to_vmem [thread:$0]  (!%p2839_p9), %s3406_s6, 16, %s344_s15, [#allocation10]  }
  0x3d   : > { %s3408_s7 = sld [smem:[#allocation33_spill]] }
  0x43   : > { %s2394_s17 = scalar_lea.hbm %s3408_s7, 1024 }
  0x44   : > { %p2395_p10 = scmp.ne.s32.totalorder %s3408_s7, %s2394_s17  ;;  %p2401_p5 = scmp.lt.u32.totalorder %s2394_s17, %s3408_s7 }
  0x46   : > { %p2397_p12 = pnand %p2395_p10, %p2853_p11 }
  0x48   : > { %p2398_p1 = pneg %p2397_p12 }
  0x4a   : > { %p2403_p6 = pnand %p2401_p5, %p2398_p1 }
  0x4c   : > { %2406 = shalt.err (!%p2403_p6)
}
  0x4d   : > { %s2407_s15 = scalar_lea.vmem %s2843_s20, 1024  ;;  %p2415_p2 = scmp.lt.s32.totalorder %s2843_s20, %s2843_s20 }
  0x4e   : > { %p2408_p7 = scmp.ne.s32.totalorder %s2843_s20, %s2407_s15  ;;  %p2416_p3 = scmp.lt.s32.totalorder %s2407_s15, %s2407_s15 }
  0x50   : > { %p2410_p13 = pnand %p2408_p7, %p2853_p11  ;;  %p2417_p4 = por %p2416_p3, %p2415_p2 }
  0x52   : > { %p2411_p0 = pneg %p2410_p13 }
  0x54   : > { %p2418_p8 = pnand %p2417_p4, %p2411_p0 }
  0x56   : > { %2421 = shalt.err (!%p2418_p8)
}
  0x57   : > { %s3369_s23 = smov 64   ;;  %s3370_s24 = smov 4  }
  0x58   : > { %2087 = dma.hbm_to_vmem [thread:$0]  (!%p2839_p9), %s3408_s7, 1024, %s2843_s20, [#allocation13], %s3369_s23, %s3369_s23, %s3370_s24  }
  0x59   : > { %s40_s1 = sadd.s32 1, %s2672_s25  ;;  %s43_s10 = sadd.s32 1, %s2676_s26 }
  0x5a   : > { %p41_p10 = scmp.ge.s32.totalorder %s40_s1, 3  ;;  %p3381_p12 = scmp.eq.s32.totalorder %s2680_s27, 0 }
  0x5b   : > { %s125_s17 = sadd.s32 1, %s2648_s19  ;;  %p132_p1 = scmp.ne.s32.totalorder %s2648_s19, %s2644_s18 }
  0x5c   : > { %s3462_s1 = smov (%p41_p10, %s40_s1), 0  ;;  %s3464_s10 = smov (!%p41_p10, %s43_s10), %s2676_s26 }
  0x5d   : > { %3409 = sst [smem:[#allocation27_spill]] %s3462_s1  ;;  %s120_s11 = ssub.s32 %s2672_s25, %s3462_s1 }
  0x5e   : > { %p2908_p5 = por %p132_p1, %p3381_p12  ;;  %p45_p6 = scmp.ge.s32.totalorder %s3464_s10, 2 }
  0x5f   : > { %p3380_p7 = scmp.lt.s32.totalorder %s2680_s27, 6  ;;  %s416_s28 = sand.u32 1, %s2648_s19  }
  0x60   : > { %s3466_s10 = smov (%p45_p6, %s3464_s10), 0  ;;  %s1833_s23 = sshll.u32 %s416_s28, 9 }
  0x61   : > { %3411 = sst [smem:[#allocation28_spill]] %s3466_s10  ;;  %s2918_s15 = ssub.s32 %s2676_s26, %s3466_s10 }
  0x62   : > { %s122_s9 = sor.u32 %s120_s11, %s2918_s15  ;;  %s1835_s24 = sshll.u32 %s2676_s26, 1 }
  0x63   : > { %p123_p0 = scmp.eq.s32.totalorder %s122_s9, 0  ;;  %s1978_s7 = sshll.u32 %s2672_s25, 8 }
  0x64   : > { %s425_s1 = sadd.s32 %s1978_s7, %s1835_s24  ;;  %s418_s29 = scalar_lea.vmem [#allocation6], %s1833_s23 }
  0x65   : > { %s2925_s6 = scalar_select %p123_p0, %s2648_s19, %s125_s17  }
  0x66   : > { %s428_s12 = sshll.u32 %s418_s29, 4  ;;  %s1837_s20 = sshll.u32 %s425_s1, 6  ;;  %s2928_s12 = int_to_ptr.vmem [resolvable:$true] %s428_s12 }
  0x67   : > { %s2933_s30 = scalar_lea.hbm %s3351_s3, %s1837_s20  ;;  %p2939_p2 = pnand %p3380_p7, %p2908_p5 }
  0x68   : > { %s2686_s7 = smov [#allocation14]   ;;  %s3413_s23 = sand.u32 1, %s2680_s27  }
  0x69   : > { %s2943_s29 = sshll.u32 %s2686_s7, 4  ;;  %s2947_s24 = scalar_lea.sflag [#allocation7], %s3413_s23  ;;  %s368_s29 = int_to_ptr.vmem [resolvable:$true] %s2943_s29 }
  0x6a   : > { %s2422_s18 = scalar_lea.hbm %s2933_s30, 8192  ;;  %p2424_p4 = pneg %p2939_p2 }
  0x6b   : > { %p2423_p3 = scmp.ne.s32.totalorder %s2933_s30, %s2422_s18  ;;  %s2427_s11 = scalar_lea.hbm %s3351_s3, 49152 }
  0x6c   : > { %p2428_p1 = scmp.lt.u32.totalorder %s2933_s30, %s3351_s3  ;;  %p2429_p5 = scmp.lt.u32.totalorder %s2427_s11, %s2422_s18 }
  0x6d   : > { %p2425_p8 = pnand %p2424_p4, %p2423_p3  ;;  %p2431_p0 = scmp.lt.u32.totalorder %s2422_s18, %s2933_s30 }
  0x6e   : > { %p2430_p6 = por %p2429_p5, %p2428_p1 }
  0x6f   : > { %p2426_p10 = pneg %p2425_p8 }
  0x70   : > { %p2432_p7 = por %p2431_p0, %p2430_p6 }
  0x72   : > { %p2433_p12 = pnand %p2432_p7, %p2426_p10 }
  0x74   : > { %2436 = shalt.err (!%p2433_p12)
}
  0x75   : > { %s2437_s9 = scalar_lea.vmem %s2928_s12, 8192  ;;  %s2687_s28 = smov [#allocation6]  }
  0x76   : > { %p2438_p3 = scmp.ne.s32.totalorder %s2928_s12, %s2437_s9  ;;  %s2442_s7 = sshll.u32 %s2687_s28, 4  ;;  %s2443_s7 = int_to_ptr.vmem [resolvable:$false] %s2442_s7 }
  0x77   : > { %s2444_s23 = scalar_lea.vmem %s2443_s7, 16384  ;;  %p2445_p9 = scmp.lt.s32.totalorder %s2928_s12, %s2443_s7 }
  0x78   : > { %p2440_p8 = pnand %p2438_p3, %p2424_p4  ;;  %p2446_p1 = scmp.lt.s32.totalorder %s2444_s23, %s2437_s9 }
  0x7a   : > { %p2441_p13 = pneg %p2440_p8  ;;  %p2447_p5 = por %p2446_p1, %p2445_p9 }
  0x7c   : > { %p2448_p6 = pnand %p2447_p5, %p2441_p13 }
  0x7e   : > { %2451 = shalt.err (!%p2448_p6)
}
  0x7f   : > { %s3384_s18 = smov 256   ;;  %s2689_s1 = smov 128  }
  0x80   : > { %s2690_s10 = smov 8   ;;  %s2452_s20 = scalar_lea.hbm %s3356_s8, 16 }
  0x81   : > { %2097 = dma.hbm_to_vmem [thread:$0]  (!%p2939_p2), %s2933_s30, 8192, %s2928_s12, %s2947_s24, %s3384_s18, %s2689_s1, %s2690_s10  }
  0x82   : > { %p2453_p9 = scmp.ne.s32.totalorder %s3356_s8, %s2452_s20  ;;  %p2459_p13 = scmp.lt.u32.totalorder %s2452_s20, %s3356_s8 }
  0x84   : > { %p2455_p12 = pnand %p2453_p9, %p2853_p11 }
  0x86   : > { %p2456_p7 = pneg %p2455_p12 }
  0x88   : > { %p2461_p4 = pnand %p2459_p13, %p2456_p7 }
  0x8a   : > { %2464 = shalt.err (!%p2461_p4)
}
  0x8b   : > { %s2465_s17 = scalar_lea.vmem %s368_s29, 16  ;;  %s2472_s30 = scalar_lea.vmem %s368_s29, 32 }
  0x8c   : > { %p2466_p2 = scmp.ne.s32.totalorder %s368_s29, %s2465_s17  ;;  %p2473_p3 = scmp.lt.s32.totalorder %s368_s29, %s368_s29 }
  0x8d   : > { %p2474_p8 = scmp.lt.s32.totalorder %s2472_s30, %s2465_s17 }
  0x8e   : > { %p2468_p10 = pnand %p2466_p2, %p2853_p11 }
  0x8f   : > { %p2475_p1 = por %p2474_p8, %p2473_p3 }
  0x90   : > { %p2469_p0 = pneg %p2468_p10 }
  0x92   : > { %p2476_p5 = pnand %p2475_p1, %p2469_p0 }
  0x94   : > { %2479 = shalt.err (!%p2476_p5)
}
  0x95   : > { %p3414_p6 = scmp.ne.s32.totalorder %s3405_s16, 0  ;;  %s97_s14 = sadd.s32 1, %s2660_s22 }
  0x96   : > { %p104_p11 = scmp.ne.s32.totalorder %s2660_s22, %s2656_s21  ;;  %p3415_p9 = scmp.eq.s32.totalorder %s2918_s15, 0 }
  0x97   : > { %2090 = dma.hbm_to_vmem [thread:$0]  (!%p3414_p6), %s3356_s8, 16, %s368_s29, [#allocation13]  }
  0x98   : > { %s3003_s0 = scalar_select %p3415_p9, %s2660_s22, %s97_s14  }
  0x99   : > { %p3416_p12 = scmp.eq.s32.totalorder %s2680_s27, 0  ;;  %s3008_s16 = sand.u32 1, %s2660_s22  }
  0x9a   : > { %s3383_s20 = sshll.u32 %s3008_s16, 7  ;;  %s1977_s9 = sshll.u32 %s2676_s26, 7 }
  0x9b   : > { %p106_p7 = por %p3416_p12, %p104_p11  ;;  %s3417_s2 = sld [smem:[#allocation31_spill]] }
  0x9c   : > { %s397_s15 = scalar_lea.vmem [#allocation4], %s3383_s20  ;;  %p3418_p13 = scmp.lt.s32.totalorder %s2680_s27, 6 }
  0x9d   : > { %s404_s29 = sshll.u32 %s397_s15, 4  ;;  %s1979_s12 = sshll.u32 %s2676_s26, 5  ;;  %s3019_s29 = int_to_ptr.vmem [resolvable:$true] %s404_s29 }
  0x9e   : > { %p3023_p4 = pnand %p3418_p13, %p106_p7  ;;  %s394_s11 = scalar_lea.sflag [#allocation5], %s3008_s16 }
  0xa0   : > { %s3419_s17 = scalar_select %p3023_p4, 1, 0 }
  0xa1   : > { %s3015_s23 = scalar_lea.hbm %s3417_s2, %s1977_s9  ;;  %p3034_p10 = pneg %p3023_p4 }
  0xa2   : > { %s2480_s14 = scalar_lea.hbm %s3015_s23, 2048  ;;  %s2485_s15 = scalar_lea.hbm %s3417_s2, 4096 }
  0xa3   : > { %p2481_p2 = scmp.ne.s32.totalorder %s3015_s23, %s2480_s14  ;;  %p2486_p8 = scmp.lt.u32.totalorder %s3015_s23, %s3417_s2 }
  0xa4   : > { %p2487_p1 = scmp.lt.u32.totalorder %s2485_s15, %s2480_s14  ;;  %p2489_p6 = scmp.lt.u32.totalorder %s2480_s14, %s3015_s23 }
  0xa5   : > { %p2483_p0 = pnand %p3034_p10, %p2481_p2 }
  0xa6   : > { %p2488_p5 = por %p2487_p1, %p2486_p8 }
  0xa7   : > { %p2484_p3 = pneg %p2483_p0 }
  0xa8   : > { %p2490_p11 = por %p2489_p6, %p2488_p5 }
  0xaa   : > { %p2491_p9 = pnand %p2490_p11, %p2484_p3 }
  0xac   : > { %2494 = shalt.err (!%p2491_p9)
}
  0xad   : > { %s2495_s30 = scalar_lea.vmem %s3019_s29, 2048  ;;  %s2691_s28 = smov [#allocation4]  }
  0xae   : > { %p2496_p12 = scmp.ne.s32.totalorder %s3019_s29, %s2495_s30  ;;  %s2500_s7 = sshll.u32 %s2691_s28, 4  ;;  %s2501_s7 = int_to_ptr.vmem [resolvable:$false] %s2500_s7 }
  0xaf   : > { %s2502_s18 = scalar_lea.vmem %s2501_s7, 4096  ;;  %p2503_p2 = scmp.lt.s32.totalorder %s3019_s29, %s2501_s7 }
  0xb0   : > { %p2498_p7 = pnand %p2496_p12, %p3034_p10  ;;  %p2504_p0 = scmp.lt.s32.totalorder %s2502_s18, %s2495_s30 }
  0xb2   : > { %p2499_p13 = pneg %p2498_p7  ;;  %p2505_p8 = por %p2504_p0, %p2503_p2 }
  0xb4   : > { %p2506_p1 = pnand %p2505_p8, %p2499_p13 }
  0xb6   : > { %2509 = shalt.err (!%p2506_p1)
}
  0xb7   : > { %s3421_s20 = smov 256   ;;  %s3067_s30 = scalar_lea.hbm %s3352_s4, %s1979_s12 }
  0xb8   : > { %2094 = dma.hbm_to_vmem [thread:$0]  (!%p3023_p4), %s3015_s23, 2048, %s3019_s29, %s394_s11, %s3421_s20, %s2689_s1, %s2690_s10  }
  0xb9   : > { %s3422_s28 = sshll.u32 %s3008_s16, 1  ;;  %s2510_s2 = scalar_lea.hbm %s3067_s30, 32 }
  0xba   : > { %s442_s7 = scalar_lea.vmem [#allocation8], %s3422_s28  ;;  %p2511_p3 = scmp.ne.s32.totalorder %s3067_s30, %s2510_s2 }
  0xbb   : > { %s450_s18 = sshll.u32 %s442_s7, 4  ;;  %s2515_s23 = scalar_lea.hbm %s3352_s4, 64  ;;  %s451_s18 = int_to_ptr.vmem [resolvable:$true] %s450_s18 }
  0xbc   : > { %p2513_p5 = pnand %p2511_p3, %p3034_p10  ;;  %p2516_p11 = scmp.lt.u32.totalorder %s3067_s30, %s3352_s4 }
  0xbd   : > { %p2517_p9 = scmp.lt.u32.totalorder %s2515_s23, %s2510_s2  ;;  %p2519_p7 = scmp.lt.u32.totalorder %s2510_s2, %s3067_s30 }
  0xbe   : > { %p2514_p6 = pneg %p2513_p5 }
  0xbf   : > { %p2518_p12 = por %p2517_p9, %p2516_p11 }
  0xc1   : > { %p2520_p13 = por %p2519_p7, %p2518_p12 }
  0xc3   : > { %p2521_p2 = pnand %p2520_p13, %p2514_p6 }
  0xc5   : > { %2524 = shalt.err (!%p2521_p2)
}
  0xc6   : > { %s2525_s11 = scalar_lea.vmem %s451_s18, 32  ;;  %s2692_s20 = smov [#allocation8]  }
  0xc7   : > { %p2526_p0 = scmp.ne.s32.totalorder %s451_s18, %s2525_s11  ;;  %s2530_s14 = sshll.u32 %s2692_s20, 4  ;;  %s2531_s14 = int_to_ptr.vmem [resolvable:$false] %s2530_s14 }
  0xc8   : > { %s2532_s15 = scalar_lea.vmem %s2531_s14, 64  ;;  %p2533_p3 = scmp.lt.s32.totalorder %s451_s18, %s2531_s14 }
  0xc9   : > { %p2528_p8 = pnand %p2526_p0, %p3034_p10  ;;  %p2534_p5 = scmp.lt.s32.totalorder %s2532_s15, %s2525_s11 }
  0xcb   : > { %p2529_p1 = pneg %p2528_p8  ;;  %p2535_p4 = por %p2534_p5, %p2533_p3 }
  0xcd   : > { %p2536_p9 = pnand %p2535_p4, %p2529_p1 }
  0xcf   : > { %2539 = shalt.err (!%p2536_p9)
}
  0xd0   : > { %p3423_p11 = scmp.ne.s32.totalorder %s3419_s17, 0  ;;  %s1980_s2 = sshll.u32 %s2676_s26, 11 }
  0xd1   : > { %s3093_s1 = scalar_lea.hbm %s3353_s5, %s1980_s2  ;;  %s3424_s10 = sshll.u32 %s3008_s16, 7 }
  0xd2   : > { %2100 = dma.hbm_to_vmem [thread:$0]  (!%p3423_p11), %s3067_s30, 32, %s451_s18, %s2947_s24  }
  0xd3   : > { %s461_s23 = scalar_lea.vmem [#allocation9], %s3424_s10  ;;  %s3425_s12 = sand.u32 1, %s2680_s27  }
  0xd4   : > { %s468_s29 = sshll.u32 %s461_s23, 4  ;;  %s3101_s11 = scalar_lea.sflag [#allocation10], %s3425_s12  ;;  %s3097_s29 = int_to_ptr.vmem [resolvable:$true] %s468_s29 }
  0xd5   : > { %s2540_s20 = scalar_lea.hbm %s3093_s1, 2048  ;;  %s2545_s16 = scalar_lea.hbm %s3353_s5, 4096 }
  0xd6   : > { %p2541_p4 = scmp.ne.s32.totalorder %s3093_s1, %s2540_s20  ;;  %p2546_p7 = scmp.lt.u32.totalorder %s3093_s1, %s3353_s5 }
  0xd7   : > { %p2547_p13 = scmp.lt.u32.totalorder %s2545_s16, %s2540_s20  ;;  %p2549_p0 = scmp.lt.u32.totalorder %s2540_s20, %s3093_s1 }
  0xd8   : > { %p2543_p6 = pnand %p2541_p4, %p3034_p10 }
  0xd9   : > { %p2548_p2 = por %p2547_p13, %p2546_p7 }
  0xda   : > { %p2544_p12 = pneg %p2543_p6 }
  0xdb   : > { %p2550_p8 = por %p2549_p0, %p2548_p2 }
  0xdd   : > { %p2551_p1 = pnand %p2550_p8, %p2544_p12 }
  0xdf   : > { %2554 = shalt.err (!%p2551_p1)
}
  0xe0   : > { %s2555_s15 = scalar_lea.vmem %s3097_s29, 2048  ;;  %s2693_s2 = smov [#allocation9]  }
  0xe1   : > { %p2556_p3 = scmp.ne.s32.totalorder %s3097_s29, %s2555_s15  ;;  %s2560_s28 = sshll.u32 %s2693_s2, 4  ;;  %s2561_s28 = int_to_ptr.vmem [resolvable:$false] %s2560_s28 }
  0xe2   : > { %s2562_s7 = scalar_lea.vmem %s2561_s28, 4096  ;;  %p2563_p4 = scmp.lt.s32.totalorder %s3097_s29, %s2561_s28 }
  0xe3   : > { %p2558_p5 = pnand %p2556_p3, %p3034_p10  ;;  %p2564_p6 = scmp.lt.s32.totalorder %s2562_s7, %s2555_s15 }
  0xe5   : > { %p2559_p9 = pneg %p2558_p5  ;;  %p2565_p7 = por %p2564_p6, %p2563_p4 }
  0xe7   : > { %p2566_p13 = pnand %p2565_p7, %p2559_p9 }
  0xe9   : > { %2569 = shalt.err (!%p2566_p13)
}
  0xea   : > { %s3426_s10 = smov 4   ;;  %s3427_s23 = smov 64  }
  0xeb   : > { %2103 = dma.hbm_to_vmem [thread:$0]  (!%p3423_p11), %s3093_s1, 2048, %s3097_s29, %s3101_s11, %s3427_s23, %s3427_s23, %s3426_s10  }
  0xec   : > { %p3428_p10 = scmp.ne.s32.totalorder %s3404_s13, 0 }
  0xed   : > { %s3429_s9 = sld [smem:[#allocation25_spill]] (!%p3428_p10)  ;;  %s482_s12 = sand.u32 (!%p3428_p10), 1, %s2656_s21  }
  0xee   : > { %480 = sbr.rel (%p3428_p10) target bundleno = 1533 (0x5fd), region = 64  ;;  %s1845_s20 = sshll.u32 (!%p3428_p10), %s482_s12, 7 }
  0xef   : > { %s483_s24 = scalar_lea.sflag (!%p3428_p10), [#allocation5], %s482_s12  ;;  %s3131_s30 = scalar_lea.vmem (!%p3428_p10), [#allocation4], %s1845_s20 }
  0xf3   : > { %p3430_p12 = scmp.ne.s32.totalorder (!%p3428_p10), %s3429_s9, 0 }
  0xf5   : > { %2615 = dma.done.wait (%p3430_p12), %s483_s24, 2048  }
  0xf6   : > { %2617 = vsyncadd (%p3430_p12), %s483_s24, 4294965248  ;;  %s3431_s17 = sadd.s32 4294967295, %s2680_s27   ;;  %s3432_s16 = sld [smem:[#allocation21_spill]] }
  0xf7   : > { %s3433_s18 = sld [smem:[#allocation26_spill]]  ;;  %s491_s1 = sand.u32 1, %s3431_s17  }
  0xf8   : > { %s492_s11 = scalar_lea.sflag [#allocation7], %s491_s1 }
  0xfc   : > { %s493_s29 = sand.u32 1, %s3432_s16  }
  0xfd   : > { %s1846_s13 = sshll.u32 %s493_s29, 9  ;;  %p3434_p11 = scmp.ne.s32.totalorder %s3433_s18, 0 }
  0xfe   : > { %s3140_s14 = scalar_lea.vmem [#allocation6], %s1846_s13 }
  0xff   : > { %2619 = dma.done.wait (%p3434_p11), %s492_s11, 8192  }
 0x100   : > { %2621 = vsyncadd (%p3434_p11), %s492_s11, 4294959104  ;;  %s1847_s15 = sshll.u32 %s482_s12, 1 }
 0x101   : > { %s3146_s2 = scalar_lea.vmem [#allocation8], %s1847_s15 }
 0x102   : > { %2623 = dma.done.wait (%p3430_p12), %s492_s11, 32  }
 0x103   : > { %2625 = vsyncadd (%p3430_p12), %s492_s11, 4294967264  ;;  %s510_s28 = scalar_lea.sflag [#allocation10], %s491_s1  ;;  %s3152_s7 = scalar_lea.vmem [#allocation9], %s1845_s20 }
 0x104   : > { %2627 = dma.done.wait (%p3430_p12), %s510_s28, 2048  }
 0x105   : > { %2629 = vsyncadd (%p3430_p12), %s510_s28, 4294965248  ;;  %s3435_s10 = sld [smem:[#allocation24_spill]] }
 0x10b   : > { %p3436_p2 = scmp.ne.s32.totalorder %s3435_s10, 0 }
 0x10d   : > { %2631 = dma.done.wait (%p3436_p2), [#allocation10], 16  }
 0x10e   : > { %2633 = vsyncadd (%p3436_p2), [#allocation10], 4294967280 }
 0x10f   : > { %2635 = dma.done.wait (%p3436_p2), [#allocation13], 1040  }
 0x110   : > { %2637 = vsyncadd (%p3436_p2), [#allocation13], 4294966256  ;;  %s3437_s23 = sld [smem:[#allocation22_spill]]  ;;  %s3438_s12 = sld [smem:[#allocation23_spill]] }
 0x111   : > { %s3439_s16 = sld [smem:[#allocation30_spill]] }
 0x116   : > { %s1852_s20 = sshll.u32 %s3437_s23, 2  ;;  %p591_p0 = scmp.eq.s32.totalorder %s3438_s12, 0 }
 0x117   : > { %p580_p8 = scmp.lt.s32.totalorder %s1852_s20, 11  ;;  %p592_p1 = scmp.eq.s32.totalorder %s3437_s23, 0 }
 0x119   : > { %s3468_s20 = smov (!%p580_p8, %s1852_s20), 11  ;;  %p593_p3 = pnand %p592_p1, %p591_p0 }
 0x11a   : > { %s1853_s9 = sshll.u32 %s3468_s20, 2  ;;  %v1854_v0 = vld [vmem:[#allocation11] ss:$0 sm:$0xff] (!%p593_p3) }
 0x11b   : > { %s3172_s18 = scalar_lea.vmem %s3439_s16, %s1853_s9  ;;  %596 = sbr.rel (%p593_p3) target bundleno = 290 (0x122), region = 96  ;;  %604 = vst [vmem:[#allocation3] sm:$0xff] (!%p593_p3), %v1854_v0 }
 0x122 PF: > { %s3440_s1 = sld [smem:[#allocation22_spill]] }
 0x128   : > { %p1855_p5 = scmp.ne.s32.totalorder %s3440_s1, 0 }
 0x129   : > { %v2210_v1 = vld [vmem:[%s3131_s30 + $0x4] ss:$8 sps:$4 sm:$0xff] (!%p1855_p5)   ;;  %v2212_v2 = vld [vmem:[%s3131_s30] ss:$8 sps:$4 sm:$0xff] (!%p1855_p5)   ;;  %v2694_v3 = vmov (!%p1855_p5), 0   ;;  %s3441_s11 = sld [smem:[#allocation29_spill]] (!%p1855_p5)  ;;  %v628_v20 = vlaneseq (!%p1855_p5) }
 0x12a   : > { %607 = sbr.rel (%p1855_p5) target bundleno = 546 (0x222), region = 100  ;;  %750 = vmatprep.mubr.bf16.mxu0 (!%p1855_p5), %v2694_v3  ;;  %718 = vmatprep.subr.bf16.mxu0 (!%p1855_p5), %v2210_v1  ;;  %v2213_v4 = vld [vmem:[%s3131_s30 + $0x14] ss:$8 sps:$4 sm:$0xff] (!%p1855_p5)   ;;  %v2215_v5 = vld [vmem:[%s3131_s30 + $0x10] ss:$8 sps:$4 sm:$0xff] (!%p1855_p5)  }
 0x12b   : > { %719 = vmatpush1.bf16.msra.mxu0 (!%p1855_p5), %v2212_v2  ;;  %v2216_v6 = vld [vmem:[%s3131_s30 + $0x24] ss:$8 sps:$4 sm:$0xff] (!%p1855_p5)   ;;  %v2218_v7 = vld [vmem:[%s3131_s30 + $0x20] ss:$8 sps:$4 sm:$0xff] (!%p1855_p5)   ;;  %v2219_v8 = vld [vmem:[%s3131_s30 + $0x34] ss:$8 sps:$4 sm:$0xff] (!%p1855_p5)  }
 0x12c   : > { %720 = vmatprep.subr.bf16.mxu0 (!%p1855_p5), %v2213_v4  ;;  %v2221_v9 = vld [vmem:[%s3131_s30 + $0x30] ss:$8 sps:$4 sm:$0xff] (!%p1855_p5)   ;;  %v2222_v10 = vld [vmem:[%s3131_s30 + $0x44] ss:$8 sps:$4 sm:$0xff] (!%p1855_p5)   ;;  %v2224_v11 = vld [vmem:[%s3131_s30 + $0x40] ss:$8 sps:$4 sm:$0xff] (!%p1855_p5)  }
 0x12d   : > { %v2225_v12 = vld [vmem:[%s3131_s30 + $0x54] ss:$8 sps:$4 sm:$0xff] (!%p1855_p5)   ;;  %v2227_v13 = vld [vmem:[%s3131_s30 + $0x50] ss:$8 sps:$4 sm:$0xff] (!%p1855_p5)   ;;  %v2228_v14 = vld [vmem:[%s3131_s30 + $0x64] ss:$8 sps:$4 sm:$0xff] (!%p1855_p5)  }
 0x12e   : > { %v2230_v15 = vld [vmem:[%s3131_s30 + $0x60] ss:$8 sps:$4 sm:$0xff] (!%p1855_p5)   ;;  %v2231_v16 = vld [vmem:[%s3131_s30 + $0x74] ss:$8 sps:$4 sm:$0xff] (!%p1855_p5)   ;;  %v2233_v17 = vld [vmem:[%s3131_s30 + $0x70] ss:$8 sps:$4 sm:$0xff] (!%p1855_p5)  }
 0x12f   : > { %721 = vmatpush1.bf16.msra.mxu0 (!%p1855_p5), %v2215_v5  ;;  %v608_v18 = vld [vmem:[%s3441_s11] sm:$0xff] (!%p1855_p5)  ;;  %v629_v21 = vshrl.u32 (!%p1855_p5), %v628_v20, 7  ;;  %v626_v23 = vld [vmem:[%s3146_s2] sm:$0x3] (!%p1855_p5) }
 0x130   : > { %722 = vmatprep.subr.bf16.mxu0 (!%p1855_p5), %v2216_v6  ;;  %v609_v19 = vpack.c.bf16 (!%p1855_p5), %v608_v18, %v608_v18 }
 0x131   : > { %v630_v22 = vsub.s32 0, %v629_v21  ;;  %v634_v24 = vsub.s32 1, %v629_v21 }
 0x133   : > { %723 = vmatpush1.bf16.msra.mxu0 %v2218_v7  ;;  %v631_v25 = vrot.slane %v626_v23, %v630_v22  ;;  %v635_v26 = vrot.slane %v626_v23, %v634_v24 }
 0x134   : > { %724 = vmatprep.subr.bf16.mxu0 %v2219_v8 }
 0x137   : > { %725 = vmatpush1.bf16.msra.mxu0 %v2221_v9 }
 0x138   : > { %726 = vmatprep.subr.bf16.mxu0 %v2222_v10 }
 0x13b   : > { %727 = vmatpush1.bf16.msra.mxu0 %v2224_v11 }
 0x13c   : > { %728 = vmatprep.subr.bf16.mxu0 %v2225_v12 }
 0x13f   : > { %729 = vmatpush1.bf16.msra.mxu0 %v2227_v13 }
 0x140   : > { %730 = vmatprep.subr.bf16.mxu0 %v2228_v14 }
 0x143   : > { %731 = vmatpush1.bf16.msra.mxu0 %v2230_v15 }
 0x144   : > { %732 = vmatprep.subr.bf16.mxu0 %v2231_v16 }
 0x147   : > { %733 = vmatpush1.bf16.msra.mxu0 %v2233_v17 }
 0x14a   : > { %751 = vmatmul.mubr.bf16.vlgmr.msra.gmra.mrb[0].mxu0 %v609_v19 }
 0x21d   : > { %v752_v27 = vpop.f32.mrb[0].mxu0 }
 0x21e   : > { %v753_v28 = vadd.f32 %v752_v27, %v631_v25  ;;  %v754_v29 = vpop.f32.mrb[1].mxu0 }
 0x21f   : > { %v755_v30 = vadd.f32 %v754_v29, %v635_v26  ;;  %v756_v31 = vpop.f32.mrb[2].mxu0 }
 0x220   : > { %759 = vst [vmem:[#allocation2] sm:$0xff] %v753_v28  ;;  %v757_v32 = vpop.f32.mrb[3].mxu0 }
 0x221   : > { %760 = vst [vmem:[#allocation2 + $0x8] sm:$0xff] %v755_v30 }
 0x222 PF: > { %v2234_v33 = vld [vmem:[%s3140_s14 + $0x4] ss:$8 sps:$4 sm:$0xff]   ;;  %v2238_v35 = vld [vmem:[%s3140_s14] ss:$8 sps:$4 sm:$0xff]   ;;  %v2240_v37 = vld [vmem:[%s3140_s14 + $0x14] ss:$8 sps:$4 sm:$0xff]  }
 0x223   : > { %v2236_v34 = vld [vmem:[%s3140_s14 + $0x104] ss:$8 sps:$4 sm:$0xff]   ;;  %1163 = vmatprep.subr.bf16.mxu0 %v2234_v33  ;;  %v2239_v36 = vld [vmem:[%s3140_s14 + $0x100] ss:$8 sps:$4 sm:$0xff]   ;;  %v2242_v38 = vld [vmem:[%s3140_s14 + $0x114] ss:$8 sps:$4 sm:$0xff]  }
 0x224   : > { %1204 = vmatprep.subr.bf16.mxu1 %v2236_v34  ;;  %1164 = vmatpush1.bf16.msra.mxu0 %v2238_v35  ;;  %v2244_v39 = vld [vmem:[%s3140_s14 + $0x10] ss:$8 sps:$4 sm:$0xff]   ;;  %v2246_v41 = vld [vmem:[%s3140_s14 + $0x24] ss:$8 sps:$4 sm:$0xff]   ;;  %v2250_v43 = vld [vmem:[%s3140_s14 + $0x20] ss:$8 sps:$4 sm:$0xff]  }
 0x225   : > { %1205 = vmatpush1.bf16.msra.mxu1 %v2239_v36  ;;  %1165 = vmatprep.subr.bf16.mxu0 %v2240_v37  ;;  %v2245_v40 = vld [vmem:[%s3140_s14 + $0x110] ss:$8 sps:$4 sm:$0xff]   ;;  %v2248_v42 = vld [vmem:[%s3140_s14 + $0x124] ss:$8 sps:$4 sm:$0xff]   ;;  %v2251_v44 = vld [vmem:[%s3140_s14 + $0x120] ss:$8 sps:$4 sm:$0xff]  }
 0x226   : > { %1206 = vmatprep.subr.bf16.mxu1 %v2242_v38  ;;  %v2252_v45 = vld [vmem:[%s3140_s14 + $0x34] ss:$8 sps:$4 sm:$0xff]   ;;  %v2256_v47 = vld [vmem:[%s3140_s14 + $0x30] ss:$8 sps:$4 sm:$0xff]   ;;  %v2258_v49 = vld [vmem:[%s3140_s14 + $0x44] ss:$8 sps:$4 sm:$0xff]  }
 0x227   : > { %v2254_v46 = vld [vmem:[%s3140_s14 + $0x134] ss:$8 sps:$4 sm:$0xff]   ;;  %v2257_v48 = vld [vmem:[%s3140_s14 + $0x130] ss:$8 sps:$4 sm:$0xff]   ;;  %v2260_v50 = vld [vmem:[%s3140_s14 + $0x144] ss:$8 sps:$4 sm:$0xff]  }
 0x228   : > { %1166 = vmatpush1.bf16.msra.mxu0 %v2244_v39  ;;  %v2262_v51 = vld [vmem:[%s3140_s14 + $0x40] ss:$8 sps:$4 sm:$0xff]   ;;  %v2264_v53 = vld [vmem:[%s3140_s14 + $0x54] ss:$8 sps:$4 sm:$0xff]   ;;  %v2268_v55 = vld [vmem:[%s3140_s14 + $0x50] ss:$8 sps:$4 sm:$0xff]  }
 0x229   : > { %1207 = vmatpush1.bf16.msra.mxu1 %v2245_v40  ;;  %1167 = vmatprep.subr.bf16.mxu0 %v2246_v41  ;;  %v2263_v52 = vld [vmem:[%s3140_s14 + $0x140] ss:$8 sps:$4 sm:$0xff]   ;;  %v2266_v54 = vld [vmem:[%s3140_s14 + $0x154] ss:$8 sps:$4 sm:$0xff]   ;;  %v2269_v56 = vld [vmem:[%s3140_s14 + $0x150] ss:$8 sps:$4 sm:$0xff]  }
 0x22a   : > { %1208 = vmatprep.subr.bf16.mxu1 %v2248_v42  ;;  %v2270_v57 = vld [vmem:[%s3140_s14 + $0x64] ss:$8 sps:$4 sm:$0xff]   ;;  %v2274_v59 = vld [vmem:[%s3140_s14 + $0x60] ss:$8 sps:$4 sm:$0xff]   ;;  %v2276_v61 = vld [vmem:[%s3140_s14 + $0x74] ss:$8 sps:$4 sm:$0xff]  }
 0x22b   : > { %v2272_v58 = vld [vmem:[%s3140_s14 + $0x164] ss:$8 sps:$4 sm:$0xff]   ;;  %v2275_v60 = vld [vmem:[%s3140_s14 + $0x160] ss:$8 sps:$4 sm:$0xff]   ;;  %v2278_v62 = vld [vmem:[%s3140_s14 + $0x174] ss:$8 sps:$4 sm:$0xff]  }
 0x22c   : > { %1168 = vmatpush1.bf16.msra.mxu0 %v2250_v43  ;;  %v2280_v63 = vld [vmem:[%s3140_s14 + $0x70] ss:$8 sps:$4 sm:$0xff]   ;;  %v2282_v1 = vld [vmem:[%s3140_s14 + $0x84] ss:$8 sps:$4 sm:$0xff]   ;;  %v2286_v3 = vld [vmem:[%s3140_s14 + $0x80] ss:$8 sps:$4 sm:$0xff]  }
 0x22d   : > { %1209 = vmatpush1.bf16.msra.mxu1 %v2251_v44  ;;  %1169 = vmatprep.subr.bf16.mxu0 %v2252_v45  ;;  %v2281_v0 = vld [vmem:[%s3140_s14 + $0x170] ss:$8 sps:$4 sm:$0xff]   ;;  %v2284_v2 = vld [vmem:[%s3140_s14 + $0x184] ss:$8 sps:$4 sm:$0xff]   ;;  %v2287_v4 = vld [vmem:[%s3140_s14 + $0x180] ss:$8 sps:$4 sm:$0xff]  }
 0x22e   : > { %1210 = vmatprep.subr.bf16.mxu1 %v2254_v46  ;;  %v2288_v5 = vld [vmem:[%s3140_s14 + $0x94] ss:$8 sps:$4 sm:$0xff]   ;;  %v2292_v7 = vld [vmem:[%s3140_s14 + $0x90] ss:$8 sps:$4 sm:$0xff]   ;;  %v2294_v9 = vld [vmem:[%s3140_s14 + $0xa4] ss:$8 sps:$4 sm:$0xff]  }
 0x22f   : > { %v2290_v6 = vld [vmem:[%s3140_s14 + $0x194] ss:$8 sps:$4 sm:$0xff]   ;;  %v2293_v8 = vld [vmem:[%s3140_s14 + $0x190] ss:$8 sps:$4 sm:$0xff]   ;;  %v2296_v10 = vld [vmem:[%s3140_s14 + $0x1a4] ss:$8 sps:$4 sm:$0xff]  }
 0x230   : > { %1170 = vmatpush1.bf16.msra.mxu0 %v2256_v47  ;;  %v2298_v11 = vld [vmem:[%s3140_s14 + $0xa0] ss:$8 sps:$4 sm:$0xff]   ;;  %v2300_v13 = vld [vmem:[%s3140_s14 + $0xb4] ss:$8 sps:$4 sm:$0xff]   ;;  %v2304_v18 = vld [vmem:[%s3140_s14 + $0xb0] ss:$8 sps:$4 sm:$0xff]  }
 0x231   : > { %1211 = vmatpush1.bf16.msra.mxu1 %v2257_v48  ;;  %1171 = vmatprep.subr.bf16.mxu0 %v2258_v49  ;;  %v2299_v12 = vld [vmem:[%s3140_s14 + $0x1a0] ss:$8 sps:$4 sm:$0xff]   ;;  %v2302_v14 = vld [vmem:[%s3140_s14 + $0x1b4] ss:$8 sps:$4 sm:$0xff]   ;;  %v2305_v19 = vld [vmem:[%s3140_s14 + $0x1b0] ss:$8 sps:$4 sm:$0xff]  }
 0x232   : > { %1212 = vmatprep.subr.bf16.mxu1 %v2260_v50  ;;  %v763_v15 = vld [vmem:[%s3172_s18] sm:$0xff]  ;;  %v764_v17 = vld [vmem:[%s3172_s18 + $0x8] sm:$0xff]  ;;  %s3442_s30 = sld [smem:[#allocation22_spill]] }
 0x233   : > { %v1873_v16 = vcombine.high %v763_v15, %v763_v15  ;;  %v1875_v20 = vcombine.high %v764_v17, %v764_v17  ;;  %v2306_v21 = vld [vmem:[%s3140_s14 + $0xc4] ss:$8 sps:$4 sm:$0xff]   ;;  %v2310_v23 = vld [vmem:[%s3140_s14 + $0xc0] ss:$8 sps:$4 sm:$0xff]   ;;  %v2312_v25 = vld [vmem:[%s3140_s14 + $0xd4] ss:$8 sps:$4 sm:$0xff]   ;;  %v1872_v37 = vcombine.low %v763_v15, %v763_v15  ;;  %v1874_v38 = vcombine.low %v764_v17, %v764_v17 }
 0x234   : > { %1172 = vmatpush1.bf16.msra.mxu0 %v2262_v51  ;;  %v2308_v22 = vld [vmem:[%s3140_s14 + $0x1c4] ss:$8 sps:$4 sm:$0xff]   ;;  %v2311_v24 = vld [vmem:[%s3140_s14 + $0x1c0] ss:$8 sps:$4 sm:$0xff]   ;;  %v2314_v26 = vld [vmem:[%s3140_s14 + $0x1d4] ss:$8 sps:$4 sm:$0xff]  }
 0x235   : > { %1213 = vmatpush1.bf16.msra.mxu1 %v2263_v52  ;;  %1173 = vmatprep.subr.bf16.mxu0 %v2264_v53  ;;  %v2316_v27 = vld [vmem:[%s3140_s14 + $0xd0] ss:$8 sps:$4 sm:$0xff]   ;;  %v2318_v29 = vld [vmem:[%s3140_s14 + $0xe4] ss:$8 sps:$4 sm:$0xff]   ;;  %v2322_v31 = vld [vmem:[%s3140_s14 + $0xe0] ss:$8 sps:$4 sm:$0xff]  }
 0x236   : > { %1214 = vmatprep.subr.bf16.mxu1 %v2266_v54  ;;  %1195 = vmatprep.mubr.bf16.mxu0 %v1873_v16  ;;  %v2317_v28 = vld [vmem:[%s3140_s14 + $0x1d0] ss:$8 sps:$4 sm:$0xff]   ;;  %v2320_v30 = vld [vmem:[%s3140_s14 + $0x1e4] ss:$8 sps:$4 sm:$0xff]   ;;  %v2323_v32 = vld [vmem:[%s3140_s14 + $0x1e0] ss:$8 sps:$4 sm:$0xff]  }
 0x237   : > { %1236 = vmatprep.mubr.bf16.mxu1 %v1875_v20  ;;  %v2324_v33 = vld [vmem:[%s3140_s14 + $0xf4] ss:$8 sps:$4 sm:$0xff]   ;;  %v2328_v35 = vld [vmem:[%s3140_s14 + $0xf0] ss:$8 sps:$4 sm:$0xff]   ;;  %v761_v40 = vld [vmem:[#allocation2] sm:$0xff] }
 0x238   : > { %1174 = vmatpush1.bf16.msra.mxu0 %v2268_v55  ;;  %v2326_v34 = vld [vmem:[%s3140_s14 + $0x1f4] ss:$8 sps:$4 sm:$0xff]   ;;  %v2329_v36 = vld [vmem:[%s3140_s14 + $0x1f0] ss:$8 sps:$4 sm:$0xff]   ;;  %p1249_p9 = scmp.eq.s32.totalorder %s3442_s30, 2  ;;  %p1940_p4 = scmp.ne.s32.totalorder %s3442_s30, 2 }
 0x239   : > { %1215 = vmatpush1.bf16.msra.mxu1 %v2269_v56  ;;  %1175 = vmatprep.subr.bf16.mxu0 %v2270_v57  ;;  %v762_v44 = vld [vmem:[#allocation2 + $0x8] sm:$0xff]  ;;  %v2334_v53 = vld [vmem:[%s3152_s7 + $0x40] sm:$0xff] (!%p1940_p4)  }
 0x23a   : > { %1216 = vmatprep.subr.bf16.mxu1 %v2272_v58  ;;  %v2335_v54 = vld [vmem:[%s3152_s7] sm:$0xff] (!%p1940_p4)   ;;  %v2336_v55 = vld [vmem:[%s3152_s7 + $0x48] sm:$0xff] (!%p1940_p4)   ;;  %v2338_v57 = vld [vmem:[%s3152_s7 + $0x50] sm:$0xff] (!%p1940_p4)  }
 0x23b   : > { %v2337_v56 = vld [vmem:[%s3152_s7 + $0x8] sm:$0xff] (!%p1940_p4)   ;;  %v2339_v58 = vld [vmem:[%s3152_s7 + $0x10] sm:$0xff] (!%p1940_p4)  }
 0x23c   : > { %1176 = vmatpush1.bf16.msra.mxu0 %v2274_v59  ;;  %v2340_v59 = vld [vmem:[%s3152_s7 + $0x58] sm:$0xff] (!%p1940_p4)  }
 0x23d   : > { %1217 = vmatpush1.bf16.msra.mxu1 %v2275_v60  ;;  %1177 = vmatprep.subr.bf16.mxu0 %v2276_v61  ;;  %v2341_v60 = vld [vmem:[%s3152_s7 + $0x18] sm:$0xff] (!%p1940_p4)   ;;  %v2342_v61 = vld [vmem:[%s3152_s7 + $0x60] sm:$0xff] (!%p1940_p4)  }
 0x23e   : > { %1218 = vmatprep.subr.bf16.mxu1 %v2278_v62  ;;  %v2343_v62 = vld [vmem:[%s3152_s7 + $0x20] sm:$0xff] (!%p1940_p4)  }
 0x240   : > { %1178 = vmatpush1.bf16.msra.mxu0 %v2280_v63  ;;  %v2344_v63 = vld [vmem:[%s3152_s7 + $0x68] sm:$0xff] (!%p1940_p4)  }
 0x241   : > { %1219 = vmatpush1.bf16.msra.mxu1 %v2281_v0  ;;  %1179 = vmatprep.subr.bf16.mxu0 %v2282_v1 }
 0x242   : > { %1220 = vmatprep.subr.bf16.mxu1 %v2284_v2  ;;  %v2345_v2 = vld [vmem:[%s3152_s7 + $0x28] sm:$0xff] (!%p1940_p4)  }
 0x244   : > { %1180 = vmatpush1.bf16.msra.mxu0 %v2286_v3 }
 0x245   : > { %1221 = vmatpush1.bf16.msra.mxu1 %v2287_v4  ;;  %1181 = vmatprep.subr.bf16.mxu0 %v2288_v5  ;;  %v2346_v4 = vld [vmem:[%s3152_s7 + $0x70] sm:$0xff] (!%p1940_p4)  }
 0x246   : > { %1222 = vmatprep.subr.bf16.mxu1 %v2290_v6  ;;  %v2347_v5 = vld [vmem:[%s3152_s7 + $0x30] sm:$0xff] (!%p1940_p4)  }
 0x248   : > { %1182 = vmatpush1.bf16.msra.mxu0 %v2292_v7  ;;  %v2348_v7 = vld [vmem:[%s3152_s7 + $0x78] sm:$0xff] (!%p1940_p4)  }
 0x249   : > { %1223 = vmatpush1.bf16.msra.mxu1 %v2293_v8  ;;  %1183 = vmatprep.subr.bf16.mxu0 %v2294_v9  ;;  %v2349_v9 = vld [vmem:[%s3152_s7 + $0x38] sm:$0xff] (!%p1940_p4)  }
 0x24a   : > { %1224 = vmatprep.subr.bf16.mxu1 %v2296_v10 }
 0x24c   : > { %1184 = vmatpush1.bf16.msra.mxu0 %v2298_v11 }
 0x24d   : > { %1225 = vmatpush1.bf16.msra.mxu1 %v2299_v12  ;;  %1185 = vmatprep.subr.bf16.mxu0 %v2300_v13  ;;  %v1257_v12 = vld [vmem:[#allocation3] sm:$0xff] (!%p1940_p4) }
 0x24e   : > { %1226 = vmatprep.subr.bf16.mxu1 %v2302_v14 }
 0x250   : > { %1186 = vmatpush1.bf16.msra.mxu0 %v2304_v18 }
 0x251   : > { %1227 = vmatpush1.bf16.msra.mxu1 %v2305_v19  ;;  %1187 = vmatprep.subr.bf16.mxu0 %v2306_v21 }
 0x252   : > { %1228 = vmatprep.subr.bf16.mxu1 %v2308_v22 }
 0x254   : > { %1188 = vmatpush1.bf16.msra.mxu0 %v2310_v23 }
 0x255   : > { %1229 = vmatpush1.bf16.msra.mxu1 %v2311_v24  ;;  %1189 = vmatprep.subr.bf16.mxu0 %v2312_v25 }
 0x256   : > { %1230 = vmatprep.subr.bf16.mxu1 %v2314_v26 }
 0x258   : > { %1190 = vmatpush1.bf16.msra.mxu0 %v2316_v27 }
 0x259   : > { %1231 = vmatpush1.bf16.msra.mxu1 %v2317_v28  ;;  %1191 = vmatprep.subr.bf16.mxu0 %v2318_v29 }
 0x25a   : > { %1232 = vmatprep.subr.bf16.mxu1 %v2320_v30 }
 0x25c   : > { %1192 = vmatpush1.bf16.msra.mxu0 %v2322_v31 }
 0x25d   : > { %1233 = vmatpush1.bf16.msra.mxu1 %v2323_v32  ;;  %1193 = vmatprep.subr.bf16.mxu0 %v2324_v33 }
 0x25e   : > { %1234 = vmatprep.subr.bf16.mxu1 %v2326_v34 }
 0x260   : > { %1194 = vmatpush1.bf16.msra.mxu0 %v2328_v35 }
 0x261   : > { %1235 = vmatpush1.bf16.msra.mxu1 %v2329_v36  ;;  %1981 = vmatprep.subr.bf16.mxu0 (!%p1940_p4), %v2334_v53 }
 0x263   : > { %1196 = vmatmul.mubr.bf16.vlgmr.msra.gmra.mrb[0].mxu0 %v1872_v37 }
 0x264   : > { %1237 = vmatmul.mubr.bf16.vlgmr.msra.gmra.mrb[0].mxu1 %v1874_v38  ;;  %1982 = vmatpush3.bf16.msra.mxu0 (!%p1940_p4), %v2335_v54 }
 0x265   : > { %1983 = vmatprep.subr.bf16.mxu0 (!%p1940_p4), %v2336_v55 }
 0x268   : > { %1984 = vmatpush3.bf16.msra.mxu0 (!%p1940_p4), %v2337_v56 }
 0x269   : > { %1985 = vmatprep.subr.bf16.mxu0 (!%p1940_p4), %v2338_v57 }
 0x26c   : > { %1986 = vmatpush3.bf16.msra.mxu0 (!%p1940_p4), %v2339_v58 }
 0x26d   : > { %1987 = vmatprep.subr.bf16.mxu0 (!%p1940_p4), %v2340_v59 }
 0x270   : > { %1988 = vmatpush3.bf16.msra.mxu0 (!%p1940_p4), %v2341_v60 }
 0x271   : > { %1989 = vmatprep.subr.bf16.mxu0 (!%p1940_p4), %v2342_v61 }
 0x274   : > { %1990 = vmatpush3.bf16.msra.mxu0 (!%p1940_p4), %v2343_v62 }
 0x275   : > { %1991 = vmatprep.subr.bf16.mxu0 (!%p1940_p4), %v2344_v63 }
 0x278   : > { %1992 = vmatpush3.bf16.msra.mxu0 (!%p1940_p4), %v2345_v2 }
 0x279   : > { %1993 = vmatprep.subr.bf16.mxu0 (!%p1940_p4), %v2346_v4 }
 0x27c   : > { %1994 = vmatpush3.bf16.msra.mxu0 (!%p1940_p4), %v2347_v5 }
 0x27d   : > { %1995 = vmatprep.subr.bf16.mxu0 (!%p1940_p4), %v2348_v7 }
 0x280   : > { %1996 = vmatpush3.bf16.msra.mxu0 (!%p1940_p4), %v2349_v9 }
 0x336   : > { %v1197_v39 = vpop.f32.mrb[0].mxu0 }
 0x337   : > { %v1238_v41 = vpop.f32.mrb[0].mxu1  ;;  %v1199_v43 = vpop.f32.mrb[1].mxu0  ;;  %1252 = sbr.rel (%p1940_p4) target bundleno = 1060 (0x424), region = 104 }
 0x338   : > { %v1239_v42 = vadd.f32 %v1238_v41, %v1197_v39  ;;  %v1240_v45 = vpop.f32.mrb[1].mxu1  ;;  %v1201_v47 = vpop.f32.mrb[2].mxu0 }
 0x339   : > { %v1241_v46 = vadd.f32 %v1240_v45, %v1199_v43  ;;  %v1242_v48 = vpop.f32.mrb[2].mxu1  ;;  %v1202_v50 = vpop.f32.mrb[3].mxu0 }
 0x33a   : > { %v1245_v49 = vadd.f32 %v1239_v42, %v761_v40  ;;  %v1243_v51 = vpop.f32.mrb[3].mxu1 }
 0x33b   : > { %v1246_v52 = vadd.f32 %v1241_v46, %v762_v44 }
 0x33c   : > { %1247 = vst [vmem:[#allocation2] sm:$0xff] %v1245_v49 }
 0x33d   : > { %1248 = vst [vmem:[#allocation2 + $0x8] sm:$0xff] %v1246_v52 }
 0x343   : > { %v1253_v6 = vld [vmem:[#allocation2] sm:$0xff] }
 0x344   : > { %v1254_v0 = vld [vmem:[#allocation2 + $0x8] sm:$0xff]  ;;  %v1255_v8 = vmax.f32 %v1253_v6, 0.0 }
 0x345   : > { %v1256_v1 = vmax.f32 %v1254_v0, 0.0 }
 0x346   : > { %v1258_v10 = vpack.c.bf16 %v1255_v8, %v1255_v8 }
 0x347   : > { %v1259_v3 = vpack.c.bf16 %v1256_v1, %v1256_v1 }
 0x349   : > { %1420 = vmatprep.mubr.bf16.mxu0 %v1259_v3 }
 0x34a   : > { %1421 = vmatmul.mubr.bf16.vlgmr.msra.gmra.mrb[0].mxu0 %v1258_v10 }
 0x41d   : > { %v1997_v11 = vpop.f32.mrb[0].mxu0 }
 0x41e   : > { %v1998_v13 = vpop.f32.mrb[1].mxu0 }
 0x41f   : > { %v1999_v14 = vadd.f32 %v1998_v13, %v1997_v11  ;;  %v2000_v15 = vpop.f32.mrb[2].mxu0 }
 0x420   : > { %v2001_v16 = vpop.f32.mrb[3].mxu0 }
 0x421   : > { %v1428_v17 = vadd.f32 %v1999_v14, %v1257_v12 }
 0x423   : > { %1429 = vst [vmem:[#allocation3] sm:$0xff] %v1428_v17 }
 0x424 PF: > { %s3443_s14 = sld [smem:[#allocation23_spill]] }
 0x42a   : > { %p1430_p6 = scmp.eq.s32.totalorder %s3443_s14, 1 }
 0x42c   : > { %p1431_p7 = pnand %p1430_p6, %p1249_p9 }
 0x42d   : > { %v2350_v18 = vld [vmem:[#allocation12] sm:$0xff] (!%p1431_p7)   ;;  %v2695_v19 = vmov (!%p1431_p7), 0.0   ;;  %v2351_v20 = vld [vmem:[#allocation12 + $0x8] sm:$0xff] (!%p1431_p7)   ;;  %vm2696_vm0 = vmmov (!%p1431_p7), 0   ;;  %v2352_v21 = vld [vmem:[#allocation12 + $0x10] sm:$0xff] (!%p1431_p7)   ;;  %s3445_s7 = sld [smem:[#allocation34_spill]] (!%p1431_p7) }
 0x42e   : > { %1434 = sbr.rel (%p1431_p7) target bundleno = 1533 (0x5fd), region = 108  ;;  %2021 = vmatprep.subr.bf16.mxu0 (!%p1431_p7), %v2695_v19  ;;  %2041 = vmatprep.subr.bf16.mxu1 (!%p1431_p7), %v2695_v19  ;;  %v2353_v23 = vld [vmem:[#allocation12 + $0x18] sm:$0xff] (!%p1431_p7)   ;;  %v2354_v25 = vld [vmem:[#allocation12 + $0x20] sm:$0xff] (!%p1431_p7)   ;;  %v2355_v27 = vld [vmem:[#allocation12 + $0x28] sm:$0xff] (!%p1431_p7)   ;;  %s3446_s18 = sld [smem:[#allocation29_spill]] (!%p1431_p7) }
 0x42f   : > { %2022 = vmatpush3.bf16.msra.mxu0 (!%p1431_p7), %v2350_v18  ;;  %2037 = vmatprep.mubr.msk.bf16.mxu0 (!%p1431_p7), %vm2696_vm0, %v2695_v19  ;;  %v1435_v28 = vld [vmem:[#allocation3] sm:$0xff] (!%p1431_p7)  ;;  %v1957_v40 = vld [vmem:[#allocation14] ss:$0 sm:$0xff] (!%p1431_p7)  ;;  %s3447_s23 = sld [smem:[#allocation35_spill]] (!%p1431_p7)  ;;  %s3448_s9 = sld [smem:[#allocation36_spill]] (!%p1431_p7) }
 0x430   : > { %2023 = vmatprep.subr.bf16.mxu0 (!%p1431_p7), %v2695_v19  ;;  %2057 = vmatprep.mubr.msk.bf16.mxu1 (!%p1431_p7), %vm2696_vm0, %v2695_v19  ;;  %v1436_v30 = vmax.f32 (!%p1431_p7), %v1435_v28, 0.0  ;;  %v2356_v31 = vld [vmem:[#allocation12 + $0x30] sm:$0xff] (!%p1431_p7)   ;;  %v2357_v35 = vld [vmem:[#allocation12 + $0x38] sm:$0xff] (!%p1431_p7)  }
 0x433   : > { %2024 = vmatpush3.bf16.msra.mxu0 (!%p1431_p7), %v2351_v20  ;;  %v2358_v22 = vld [vmem:[%s3445_s7] sm:$0xff] (!%p1431_p7)   ;;  %v2359_v24 = vld [vmem:[%s3445_s7 + $0x8] sm:$0xff] (!%p1431_p7)   ;;  %v2360_v26 = vld [vmem:[%s3445_s7 + $0x10] sm:$0xff] (!%p1431_p7)  }
 0x434   : > { %2025 = vmatprep.subr.bf16.mxu0 (!%p1431_p7), %v2695_v19  ;;  %2042 = vmatpush3.bf16.msra.mxu1 (!%p1431_p7), %v2358_v22  ;;  %v2361_v29 = vld [vmem:[%s3445_s7 + $0x18] sm:$0xff] (!%p1431_p7)   ;;  %v1437_v32 = vld [vmem:[%s3446_s18] sm:$0xff] (!%p1431_p7)  ;;  %v2363_v36 = vld [vmem:[%s3445_s7 + $0x28] sm:$0xff] (!%p1431_p7)  }
 0x435   : > { %2043 = vmatprep.subr.bf16.mxu1 %v2695_v19  ;;  %v2362_v33 = vld [vmem:[%s3445_s7 + $0x20] sm:$0xff]   ;;  %v1438_v34 = vadd.f32 %v1437_v32, %v1436_v30  ;;  %v2364_v38 = vld [vmem:[%s3445_s7 + $0x30] sm:$0xff]   ;;  %v2365_v39 = vld [vmem:[%s3445_s7 + $0x38] sm:$0xff]  }
 0x436   : > { %v1966_v47 = vld [vmem:[%s3447_s23] ss:$0 sm:$0xff] }
 0x437   : > { %2026 = vmatpush3.bf16.msra.mxu0 %v2352_v21  ;;  %v1439_v37 = vpack.c.bf16 %v1438_v34, %v1438_v34 }
 0x438   : > { %2027 = vmatprep.subr.bf16.mxu0 %v2695_v19  ;;  %2044 = vmatpush3.bf16.msra.mxu1 %v2359_v24 }
 0x439   : > { %2045 = vmatprep.subr.bf16.mxu1 %v2695_v19 }
 0x43b   : > { %2028 = vmatpush3.bf16.msra.mxu0 %v2353_v23 }
 0x43c   : > { %2029 = vmatprep.subr.bf16.mxu0 %v2695_v19  ;;  %2046 = vmatpush3.bf16.msra.mxu1 %v2360_v26 }
 0x43d   : > { %2047 = vmatprep.subr.bf16.mxu1 %v2695_v19 }
 0x43f   : > { %2030 = vmatpush3.bf16.msra.mxu0 %v2354_v25 }
 0x440   : > { %2031 = vmatprep.subr.bf16.mxu0 %v2695_v19  ;;  %2048 = vmatpush3.bf16.msra.mxu1 %v2361_v29 }
 0x441   : > { %2049 = vmatprep.subr.bf16.mxu1 %v2695_v19 }
 0x443   : > { %2032 = vmatpush3.bf16.msra.mxu0 %v2355_v27 }
 0x444   : > { %2033 = vmatprep.subr.bf16.mxu0 %v2695_v19  ;;  %2050 = vmatpush3.bf16.msra.mxu1 %v2362_v33 }
 0x445   : > { %2051 = vmatprep.subr.bf16.mxu1 %v2695_v19 }
 0x447   : > { %2034 = vmatpush3.bf16.msra.mxu0 %v2356_v31 }
 0x448   : > { %2035 = vmatprep.subr.bf16.mxu0 %v2695_v19  ;;  %2052 = vmatpush3.bf16.msra.mxu1 %v2363_v36 }
 0x449   : > { %2053 = vmatprep.subr.bf16.mxu1 %v2695_v19 }
 0x44b   : > { %2036 = vmatpush3.bf16.msra.mxu0 %v2357_v35 }
 0x44c   : > { %2054 = vmatpush3.bf16.msra.mxu1 %v2364_v38 }
 0x44d   : > { %2055 = vmatprep.subr.bf16.mxu1 %v2695_v19 }
 0x44e   : > { %2038 = vmatmul.mubr.bf16.vlgmr.msra.gmra.mrb[0].mxu0 %v1439_v37 }
 0x450   : > { %2056 = vmatpush3.bf16.msra.mxu1 %v2365_v39 }
 0x521   : > { %v1545_v41 = vpop.f32.mrb[0].mxu0 }
 0x522   : > { %v1546_v42 = vadd.f32 %v1957_v40, %v1545_v41  ;;  %v2039_v43 = vpop.f32.mrb[1].mxu0 }
 0x523   : > { %v1548_v44 = vpop.f32.mrb[2].mxu0 }
 0x524   : > { %v1551_v45 = vpack.c.bf16 %v1546_v42, %v1546_v42  ;;  %v2040_v46 = vpop.f32.mrb[3].mxu0 }
 0x526   : > { %2058 = vmatmul.mubr.bf16.vlgmr.msra.gmra.mrb[0].mxu1 %v1551_v45 }
 0x5f9   : > { %v1657_v48 = vpop.f32.mrb[0].mxu1 }
 0x5fa   : > { %v1658_v49 = vadd.f32 %v1966_v47, %v1657_v48  ;;  %v2059_v50 = vpop.f32.mrb[1].mxu1 }
 0x5fb   : > { %v1660_v51 = vpop.f32.mrb[2].mxu1 }
 0x5fc   : > { %1663 = vst [vmem:[%s3448_s9] sm:$0xff] %v1658_v49  ;;  %v2060_v52 = vpop.f32.mrb[3].mxu1 }
 0x5fd PF: > { %s31_s27 = sadd.s32 1, %s2680_s27   ;;  %s3449_s17 = sld [smem:[#allocation21_spill]] }
 0x5fe   : > { %p28_p13 = scmp.ge.s32.totalorder %s31_s27, 8   ;;  %s3450_s16 = sld [smem:[#allocation27_spill]] }
 0x5ff   : > { %s3451_s1 = sld [smem:[#allocation28_spill]]  ;;  %s3452_s18 = smov %s2648_s19 }
 0x600   : > { %s3453_s19 = smov %s2925_s6  ;;  %s3454_s20 = smov %s2656_s21 }
 0x601   : > { %s3455_s21 = smov %s2660_s22  ;;  %s3456_s22 = smov %s3003_s0 }
 0x602   : > { %s3457_s23 = smov %s2672_s25  ;;  %s3458_s24 = smov %s2676_s26 }
 0x603   :  { %30 = sbr.rel (!%p28_p13) target bundleno = 21 (0x15), region = 168 }
 0x604   : > { %s3459_s25 = smov %s3450_s16 }
 0x605   : > { %s3460_s26 = smov %s3451_s1 }
 0x60a   :  { %1675 = vsyncpa [#allocation5], 1 }
 0x60b   :  { %1677 = vsyncpa [#allocation5 + $0x1], 1 }
 0x60c   :  { %1678 = vsyncpa [#allocation7], 1 }
 0x60d   :  { %1680 = vsyncpa [#allocation7 + $0x1], 1 }
 0x60e   :  { %1681 = vsyncpa [#allocation10], 1 }
 0x60f   :  { %1683 = vsyncpa [#allocation10 + $0x1], 1 }
 0x610   :  { %1684 = vsyncpa [#allocation13], 1 }

</bundles_post_ra>
